<compile_context>
chip_gen: v7x
topology: tpu7x:2x2x1
jax: 0.10.0
libtpu: 0.0.40
codegen_flags: <defaults>
</compile_context>

<pallas_src>
import functools

import jax
import jax.numpy as jnp
from jax.experimental import pallas as pl
from jax.experimental.pallas import tpu as pltpu


# ---------------------------------------------------------------------------
# Fused Pallas kernel: full SpGAT forward (both layers) in one invocation.
# ---------------------------------------------------------------------------
def spgat_fused_kernel(x_ref, w_hid_ref, al_ref, ar_ref, adj_ref,
                       w_out_ref, alo_ref, aro_ref, out_ref,
                       *, alpha, nheads, nhid):
    f32 = jnp.float32
    x = x_ref[...]                             # (N, Fin)
    adj = adj_ref[...]                         # (N, N) 0/1 mask
    edge = adj > 0.0                           # hoisted, shared by all heads

    n = x.shape[0]
    hf = nheads * nhid

    # ---- hidden layer: all heads in one lane-dense MXU call ----------------
    h_all = jnp.dot(x, w_hid_ref[...], preferred_element_type=f32)   # (N, H*nhid)

    # Per-head attention-logit terms, batched.  AL/AR rows are zero-padded so
    # row h only touches head h's feature block of h_all.  A @ B^T contraction
    # keeps everything on the MXU and yields f2 directly as a row (no transpose).
    nt = (((1,), (1,)), ((), ()))              # contract last dims of both sides
    f1_all = jax.lax.dot_general(h_all, al_ref[...], nt,
                                 preferred_element_type=f32)          # (N, H)
    f2_all = jax.lax.dot_general(ar_ref[...], h_all, nt,
                                 preferred_element_type=f32)          # (H, N)

    col = jax.lax.broadcasted_iota(jnp.int32, (1, hf), 1)             # hoisted
    x_cat = jnp.zeros((n, hf), f32)

    for h in range(nheads):                    # static 4-way unroll
        s = f1_all[:, h:h + 1] + f2_all[h:h + 1, :]                   # (N, N)
        leaky = jnp.where(s > 0, s, alpha * s)
        # select (not multiply) so overflow on non-edges never yields inf*0=NaN
        e = jnp.where(edge, jnp.exp(-leaky), 0.0)                     # (N, N)
        rowsum = jnp.sum(e, axis=1, keepdims=True)                    # (N, 1)
        inv = pl.reciprocal(jnp.maximum(rowsum, 1e-30), approx=True)
        # e @ h_all keeps full lane width; block h of the result is e_h @ h_h.
        hp = jnp.dot(e, h_all, preferred_element_type=f32) * inv      # (N, H*nhid)
        hp = jnp.where(hp > 0, hp, jnp.exp(hp) - 1.0)                 # ELU (concat=True)
        blk = jnp.logical_and(col >= h * nhid, col < (h + 1) * nhid)
        x_cat = jnp.where(blk, hp, x_cat)                             # lane-dense concat

    # ---- output attention layer (concat=False) -----------------------------
    h_out = jnp.dot(x_cat, w_out_ref[...], preferred_element_type=f32)   # (N, C)
    f1o = jax.lax.dot_general(h_out, alo_ref[...], nt,
                              preferred_element_type=f32)                 # (N, 1)
    f2o = jax.lax.dot_general(aro_ref[...], h_out, nt,
                              preferred_element_type=f32)                 # (1, N)
    s = f1o + f2o
    leaky = jnp.where(s > 0, s, alpha * s)
    e = jnp.where(edge, jnp.exp(-leaky), 0.0)
    rowsum = jnp.sum(e, axis=1, keepdims=True)
    inv = pl.reciprocal(jnp.maximum(rowsum, 1e-30), approx=True)
    hp = jnp.dot(e, h_out, preferred_element_type=f32) * inv             # (N, C)

    # outer F.elu, then log_softmax over classes (dim=1)
    hp = jnp.where(hp > 0, hp, jnp.exp(hp) - 1.0)
    m = jnp.max(hp, axis=1, keepdims=True)
    lse = m + jnp.log(jnp.sum(jnp.exp(hp - m), axis=1, keepdims=True))
    out_ref[...] = (hp - lse).astype(out_ref.dtype)


# ---------------------------------------------------------------------------
# Wrapper: fuse parameter layouts once, then a single pallas_call.
# ---------------------------------------------------------------------------
def spgat_forward(x, adj, params, alpha):
    """Fused SpGAT forward (eval mode). One pallas_call, everything in VMEM."""
    W_att = params["W_att"]                    # (H, Fin, nhid)
    H, Fin, nhid = W_att.shape
    N = x.shape[0]
    nclass = params["W_out"].shape[-1]

    # Fused parameter layouts (tiny, built once outside the kernel):
    #   W_hid : (Fin, H*nhid)  per-head weights concatenated on the output dim
    #   AL/AR : (H, H*nhid)    row h = head-h attention vector zero-padded into
    #                          feature block h, so one A @ B^T MXU contraction
    #                          produces every head's logit term.
    W_hid = jnp.transpose(W_att, (1, 0, 2)).reshape(Fin, H * nhid)
    eye = jnp.eye(H, dtype=jnp.float32)[:, :, None]                  # (H, H, 1)
    AL = (eye * params["al_att"][:, 0, :][:, None, :]).reshape(H, H * nhid)
    AR = (eye * params["ar_att"][:, 0, :][:, None, :]).reshape(H, H * nhid)
    W_out = params["W_out"][0]                 # (H*nhid, nclass)
    alo = params["al_out"][0]                  # (1, nclass)
    aro = params["ar_out"][0]                  # (1, nclass)

    kernel = functools.partial(spgat_fused_kernel, alpha=alpha,
                               nheads=H, nhid=nhid)

    # No grid: every operand is a whole-array VMEM block (a few tens of KiB),
    # so there is no pipelining machinery and no double-buffer duplication of
    # the shared x/adj operands.
    vmem = pl.BlockSpec(memory_space=pltpu.MemorySpace.VMEM)
    return pl.pallas_call(
        kernel,
        out_shape=jax.ShapeDtypeStruct((N, nclass), jnp.float32),
        in_specs=[vmem] * 8,
        out_specs=vmem,
    )(x, W_hid, AL, AR, adj, W_out, alo, aro)


# ---------------------------------------------------------------------------
# Pure-JAX reference for a correctness check.
# ---------------------------------------------------------------------------
def spgat_reference(x, adj, params, alpha):
    def layer(xx, W, al, ar, concat):
        outs = []
        for i in range(W.shape[0]):
            h = xx @ W[i]
            f1 = (h * al[i, 0]).sum(axis=1)
            f2 = (h * ar[i, 0]).sum(axis=1)
            s = f1[:, None] + f2[None, :]
            e = jnp.where(adj > 0, jnp.exp(-jnp.where(s > 0, s, alpha * s)), 0.0)
            hp = (e @ h) / e.sum(axis=1, keepdims=True)
            if concat:
                hp = jnp.where(hp > 0, hp, jnp.exp(hp) - 1.0)
            outs.append(hp)
        return jnp.stack(outs)

    hid = layer(x, params["W_att"], params["al_att"], params["ar_att"], True)
    H, N, nhid = hid.shape
    x_cat = jnp.transpose(hid, (1, 0, 2)).reshape(N, H * nhid)
    out = layer(x_cat, params["W_out"], params["al_out"], params["ar_out"], False)[0]
    out = jnp.where(out > 0, out, jnp.exp(out) - 1.0)
    return jax.nn.log_softmax(out, axis=1)


# ---------------------------------------------------------------------------
# Deterministic parameter init (xavier_normal_, gain=1.414), synthetic inputs.
# ---------------------------------------------------------------------------
def xavier_normal(key, shape, fan_in, fan_out, gain=1.414):
    std = gain * (2.0 / (fan_in + fan_out)) ** 0.5
    return std * jax.random.normal(key, shape, dtype=jnp.float32)


if __name__ == "__main__":
    N, nfeat, nhid, nclass, nheads = 64, 32, 16, 8, 4
    alpha = 0.2

    key = jax.random.PRNGKey(0)
    kx, kadj, kw, ka, kwo, kao = jax.random.split(key, 6)

    # node features
    x = jax.random.normal(kx, (N, nfeat), dtype=jnp.float32)

    # random symmetric sparse adjacency with self loops, as dense 0/1 mask
    probs = jax.random.uniform(kadj, (N, N))
    adj = (probs < 0.08).astype(jnp.float32)
    adj = jnp.maximum(adj, adj.T)
    adj = jnp.maximum(adj, jnp.eye(N, dtype=jnp.float32))

    # hidden attention heads: W (nfeat, nhid), a (1, 2*nhid) per head
    W_att = xavier_normal(kw, (nheads, nfeat, nhid), fan_in=nhid, fan_out=nfeat)
    a_att = xavier_normal(ka, (nheads, 1, 2 * nhid), fan_in=2 * nhid, fan_out=1)
    al_att = a_att[:, :, :nhid]           # (H, 1, nhid)
    ar_att = a_att[:, :, nhid:]           # (H, 1, nhid)

    # output head: W (nhid*nheads, nclass), a (1, 2*nclass)
    W_out = xavier_normal(kwo, (1, nhid * nheads, nclass),
                          fan_in=nclass, fan_out=nhid * nheads)
    a_out = xavier_normal(kao, (1, 1, 2 * nclass), fan_in=2 * nclass, fan_out=1)
    al_out = a_out[:, :, :nclass]
    ar_out = a_out[:, :, nclass:]

    params = dict(W_att=W_att, al_att=al_att, ar_att=ar_att,
                  W_out=W_out, al_out=al_out, ar_out=ar_out)

    out = spgat_forward(x, adj, params, alpha)
    out = jax.block_until_ready(out)

    ref = spgat_reference(x, adj, params, alpha)
    assert out.shape == (N, nclass)
    assert bool(jnp.all(jnp.isfinite(out)))
    # slightly looser atol than before: pl.reciprocal(approx=True) contributes
    # ~1e-4 relative error which the second layer / log_softmax amplify a bit.
    assert bool(jnp.allclose(out, ref, rtol=1e-2, atol=5e-3)), \
        f"max abs err {float(jnp.max(jnp.abs(out - ref)))}"

    print("KERNEL_OK")
</pallas_src>

<mosaic_0001>
module attributes {stable_mosaic.version = 11 : i64} {
  func.func @spgat_fused_kernel(%arg0: memref<64x32xf32, #tpu.memory_space<vmem>>, %arg1: memref<32x64xf32, #tpu.memory_space<vmem>>, %arg2: memref<4x64xf32, #tpu.memory_space<vmem>>, %arg3: memref<4x64xf32, #tpu.memory_space<vmem>>, %arg4: memref<64x64xf32, #tpu.memory_space<vmem>>, %arg5: memref<64x8xf32, #tpu.memory_space<vmem>>, %arg6: memref<1x8xf32, #tpu.memory_space<vmem>>, %arg7: memref<1x8xf32, #tpu.memory_space<vmem>>, %arg8: memref<64x8xf32, #tpu.memory_space<vmem>>) attributes {dimension_semantics = [], scalar_prefetch = 0 : i64, scratch_operands = 0 : i64, tpu.core_type = #tpu.core_type<tc>} {
    %c0 = arith.constant 0 : index
    %c0_0 = arith.constant 0 : index
    %0 = vector.load %arg0[%c0, %c0_0] : memref<64x32xf32, #tpu.memory_space<vmem>>, vector<64x32xf32>
    %c0_1 = arith.constant 0 : index
    %c0_2 = arith.constant 0 : index
    %1 = vector.load %arg4[%c0_1, %c0_2] : memref<64x64xf32, #tpu.memory_space<vmem>>, vector<64x64xf32>
    %cst = arith.constant 0.000000e+00 : f32
    %2 = vector.broadcast %cst : f32 to vector<64x64xf32>
    %3 = arith.cmpf ogt, %1, %2 : vector<64x64xf32>
    %c0_3 = arith.constant 0 : index
    %c0_4 = arith.constant 0 : index
    %4 = vector.load %arg1[%c0_3, %c0_4] : memref<32x64xf32, #tpu.memory_space<vmem>>, vector<32x64xf32>
    %cst_5 = arith.constant dense<0.000000e+00> : vector<64x64xf32>
    %5 = tpu.matmul %0, %4, %cst_5 {dimension_numbers = #tpu.dot_dimension_numbers<[1], [0], [0], [1], [0, 0, 1, 1], [], []>} : vector<64x32xf32>, vector<32x64xf32>, vector<64x64xf32> -> vector<64x64xf32>
    %c0_6 = arith.constant 0 : index
    %c0_7 = arith.constant 0 : index
    %6 = vector.load %arg2[%c0_6, %c0_7] : memref<4x64xf32, #tpu.memory_space<vmem>>, vector<4x64xf32>
    %cst_8 = arith.constant dense<0.000000e+00> : vector<64x4xf32>
    %7 = tpu.matmul %5, %6, %cst_8 {dimension_numbers = #tpu.dot_dimension_numbers<[1], [1], [0], [0], [0, 0, 1, 0], [], []>} : vector<64x64xf32>, vector<4x64xf32>, vector<64x4xf32> -> vector<64x4xf32>
    %c0_9 = arith.constant 0 : index
    %c0_10 = arith.constant 0 : index
    %8 = vector.load %arg3[%c0_9, %c0_10] : memref<4x64xf32, #tpu.memory_space<vmem>>, vector<4x64xf32>
    %cst_11 = arith.constant dense<0.000000e+00> : vector<4x64xf32>
    %9 = tpu.matmul %8, %5, %cst_11 {dimension_numbers = #tpu.dot_dimension_numbers<[1], [1], [0], [0], [0, 0, 1, 0], [], []>} : vector<4x64xf32>, vector<64x64xf32>, vector<4x64xf32> -> vector<4x64xf32>
    %10 = tpu.iota {dimensions = array<i32: 1>} : vector<1x64xi32>
    %cst_12 = arith.constant 0.000000e+00 : f32
    %11 = vector.broadcast %cst_12 : f32 to vector<64x64xf32>
    %12 = vector.extract_strided_slice %7 {offsets = [0, 0], sizes = [64, 1], strides = [1, 1]} : vector<64x4xf32> to vector<64x1xf32>
    %13 = vector.extract_strided_slice %9 {offsets = [0, 0], sizes = [1, 64], strides = [1, 1]} : vector<4x64xf32> to vector<1x64xf32>
    %14 = vector.broadcast %12 : vector<64x1xf32> to vector<64x64xf32>
    %15 = vector.broadcast %13 : vector<1x64xf32> to vector<64x64xf32>
    %16 = arith.addf %14, %15 : vector<64x64xf32>
    %cst_13 = arith.constant 0.000000e+00 : f32
    %17 = vector.broadcast %cst_13 : f32 to vector<64x64xf32>
    %18 = arith.cmpf ogt, %16, %17 : vector<64x64xf32>
    %cst_14 = arith.constant 2.000000e-01 : f32
    %19 = vector.broadcast %cst_14 : f32 to vector<64x64xf32>
    %20 = arith.mulf %19, %16 : vector<64x64xf32>
    %21 = arith.select %18, %16, %20 : vector<64x64xi1>, vector<64x64xf32>
    %cst_15 = arith.constant 0.000000e+00 : f32
    %22 = vector.broadcast %cst_15 : f32 to vector<64x64xf32>
    %23 = arith.subf %22, %21 : vector<64x64xf32>
    %24 = math.exp %23 : vector<64x64xf32>
    %cst_16 = arith.constant 0.000000e+00 : f32
    %25 = vector.broadcast %cst_16 : f32 to vector<64x64xf32>
    %26 = arith.select %3, %24, %25 : vector<64x64xi1>, vector<64x64xf32>
    %cst_17 = arith.constant dense<0.000000e+00> : vector<64xf32>
    %27 = vector.multi_reduction <add>, %26, %cst_17 [1] : vector<64x64xf32> to vector<64xf32>
    %28 = vector.shape_cast %27 : vector<64xf32> to vector<64x1xf32>
    %cst_18 = arith.constant 1.000000e-30 : f32
    %29 = vector.broadcast %cst_18 : f32 to vector<64x1xf32>
    %30 = arith.maximumf %28, %29 : vector<64x1xf32>
    %31 = tpu.reciprocal %30 {approx = true} : vector<64x1xf32> -> vector<64x1xf32>
    %cst_19 = arith.constant dense<0.000000e+00> : vector<64x64xf32>
    %32 = tpu.matmul %26, %5, %cst_19 {dimension_numbers = #tpu.dot_dimension_numbers<[1], [0], [0], [1], [0, 0, 1, 1], [], []>} : vector<64x64xf32>, vector<64x64xf32>, vector<64x64xf32> -> vector<64x64xf32>
    %33 = vector.broadcast %31 : vector<64x1xf32> to vector<64x64xf32>
    %34 = arith.mulf %32, %33 : vector<64x64xf32>
    %cst_20 = arith.constant 0.000000e+00 : f32
    %35 = vector.broadcast %cst_20 : f32 to vector<64x64xf32>
    %36 = arith.cmpf ogt, %34, %35 : vector<64x64xf32>
    %37 = math.exp %34 : vector<64x64xf32>
    %cst_21 = arith.constant 1.000000e+00 : f32
    %38 = vector.broadcast %cst_21 : f32 to vector<64x64xf32>
    %39 = arith.subf %37, %38 : vector<64x64xf32>
    %40 = arith.select %36, %34, %39 : vector<64x64xi1>, vector<64x64xf32>
    %c0_i32 = arith.constant 0 : i32
    %41 = vector.broadcast %c0_i32 : i32 to vector<1x64xi32>
    %42 = arith.cmpi sge, %10, %41 : vector<1x64xi32>
    %c16_i32 = arith.constant 16 : i32
    %43 = vector.broadcast %c16_i32 : i32 to vector<1x64xi32>
    %44 = arith.cmpi slt, %10, %43 : vector<1x64xi32>
    %45 = arith.andi %42, %44 : vector<1x64xi1>
    %46 = vector.shape_cast %45 : vector<1x64xi1> to vector<1x64xi1>
    %47 = vector.broadcast %46 : vector<1x64xi1> to vector<64x64xi1>
    %48 = arith.select %47, %40, %11 : vector<64x64xi1>, vector<64x64xf32>
    %49 = vector.extract_strided_slice %7 {offsets = [0, 1], sizes = [64, 1], strides = [1, 1]} : vector<64x4xf32> to vector<64x1xf32>
    %50 = vector.extract_strided_slice %9 {offsets = [1, 0], sizes = [1, 64], strides = [1, 1]} : vector<4x64xf32> to vector<1x64xf32>
    %51 = vector.broadcast %49 : vector<64x1xf32> to vector<64x64xf32>
    %52 = vector.broadcast %50 : vector<1x64xf32> to vector<64x64xf32>
    %53 = arith.addf %51, %52 : vector<64x64xf32>
    %cst_22 = arith.constant 0.000000e+00 : f32
    %54 = vector.broadcast %cst_22 : f32 to vector<64x64xf32>
    %55 = arith.cmpf ogt, %53, %54 : vector<64x64xf32>
    %cst_23 = arith.constant 2.000000e-01 : f32
    %56 = vector.broadcast %cst_23 : f32 to vector<64x64xf32>
    %57 = arith.mulf %56, %53 : vector<64x64xf32>
    %58 = arith.select %55, %53, %57 : vector<64x64xi1>, vector<64x64xf32>
    %cst_24 = arith.constant 0.000000e+00 : f32
    %59 = vector.broadcast %cst_24 : f32 to vector<64x64xf32>
    %60 = arith.subf %59, %58 : vector<64x64xf32>
    %61 = math.exp %60 : vector<64x64xf32>
    %cst_25 = arith.constant 0.000000e+00 : f32
    %62 = vector.broadcast %cst_25 : f32 to vector<64x64xf32>
    %63 = arith.select %3, %61, %62 : vector<64x64xi1>, vector<64x64xf32>
    %cst_26 = arith.constant dense<0.000000e+00> : vector<64xf32>
    %64 = vector.multi_reduction <add>, %63, %cst_26 [1] : vector<64x64xf32> to vector<64xf32>
    %65 = vector.shape_cast %64 : vector<64xf32> to vector<64x1xf32>
    %cst_27 = arith.constant 1.000000e-30 : f32
    %66 = vector.broadcast %cst_27 : f32 to vector<64x1xf32>
    %67 = arith.maximumf %65, %66 : vector<64x1xf32>
    %68 = tpu.reciprocal %67 {approx = true} : vector<64x1xf32> -> vector<64x1xf32>
    %cst_28 = arith.constant dense<0.000000e+00> : vector<64x64xf32>
    %69 = tpu.matmul %63, %5, %cst_28 {dimension_numbers = #tpu.dot_dimension_numbers<[1], [0], [0], [1], [0, 0, 1, 1], [], []>} : vector<64x64xf32>, vector<64x64xf32>, vector<64x64xf32> -> vector<64x64xf32>
    %70 = vector.broadcast %68 : vector<64x1xf32> to vector<64x64xf32>
    %71 = arith.mulf %69, %70 : vector<64x64xf32>
    %cst_29 = arith.constant 0.000000e+00 : f32
    %72 = vector.broadcast %cst_29 : f32 to vector<64x64xf32>
    %73 = arith.cmpf ogt, %71, %72 : vector<64x64xf32>
    %74 = math.exp %71 : vector<64x64xf32>
    %cst_30 = arith.constant 1.000000e+00 : f32
    %75 = vector.broadcast %cst_30 : f32 to vector<64x64xf32>
    %76 = arith.subf %74, %75 : vector<64x64xf32>
    %77 = arith.select %73, %71, %76 : vector<64x64xi1>, vector<64x64xf32>
    %c16_i32_31 = arith.constant 16 : i32
    %78 = vector.broadcast %c16_i32_31 : i32 to vector<1x64xi32>
    %79 = arith.cmpi sge, %10, %78 : vector<1x64xi32>
    %c32_i32 = arith.constant 32 : i32
    %80 = vector.broadcast %c32_i32 : i32 to vector<1x64xi32>
    %81 = arith.cmpi slt, %10, %80 : vector<1x64xi32>
    %82 = arith.andi %79, %81 : vector<1x64xi1>
    %83 = vector.shape_cast %82 : vector<1x64xi1> to vector<1x64xi1>
    %84 = vector.broadcast %83 : vector<1x64xi1> to vector<64x64xi1>
    %85 = arith.select %84, %77, %48 : vector<64x64xi1>, vector<64x64xf32>
    %86 = vector.extract_strided_slice %7 {offsets = [0, 2], sizes = [64, 1], strides = [1, 1]} : vector<64x4xf32> to vector<64x1xf32>
    %87 = vector.extract_strided_slice %9 {offsets = [2, 0], sizes = [1, 64], strides = [1, 1]} : vector<4x64xf32> to vector<1x64xf32>
    %88 = vector.broadcast %86 : vector<64x1xf32> to vector<64x64xf32>
    %89 = vector.broadcast %87 : vector<1x64xf32> to vector<64x64xf32>
    %90 = arith.addf %88, %89 : vector<64x64xf32>
    %cst_32 = arith.constant 0.000000e+00 : f32
    %91 = vector.broadcast %cst_32 : f32 to vector<64x64xf32>
    %92 = arith.cmpf ogt, %90, %91 : vector<64x64xf32>
    %cst_33 = arith.constant 2.000000e-01 : f32
    %93 = vector.broadcast %cst_33 : f32 to vector<64x64xf32>
    %94 = arith.mulf %93, %90 : vector<64x64xf32>
    %95 = arith.select %92, %90, %94 : vector<64x64xi1>, vector<64x64xf32>
    %cst_34 = arith.constant 0.000000e+00 : f32
    %96 = vector.broadcast %cst_34 : f32 to vector<64x64xf32>
    %97 = arith.subf %96, %95 : vector<64x64xf32>
    %98 = math.exp %97 : vector<64x64xf32>
    %cst_35 = arith.constant 0.000000e+00 : f32
    %99 = vector.broadcast %cst_35 : f32 to vector<64x64xf32>
    %100 = arith.select %3, %98, %99 : vector<64x64xi1>, vector<64x64xf32>
    %cst_36 = arith.constant dense<0.000000e+00> : vector<64xf32>
    %101 = vector.multi_reduction <add>, %100, %cst_36 [1] : vector<64x64xf32> to vector<64xf32>
    %102 = vector.shape_cast %101 : vector<64xf32> to vector<64x1xf32>
    %cst_37 = arith.constant 1.000000e-30 : f32
    %103 = vector.broadcast %cst_37 : f32 to vector<64x1xf32>
    %104 = arith.maximumf %102, %103 : vector<64x1xf32>
    %105 = tpu.reciprocal %104 {approx = true} : vector<64x1xf32> -> vector<64x1xf32>
    %cst_38 = arith.constant dense<0.000000e+00> : vector<64x64xf32>
    %106 = tpu.matmul %100, %5, %cst_38 {dimension_numbers = #tpu.dot_dimension_numbers<[1], [0], [0], [1], [0, 0, 1, 1], [], []>} : vector<64x64xf32>, vector<64x64xf32>, vector<64x64xf32> -> vector<64x64xf32>
    %107 = vector.broadcast %105 : vector<64x1xf32> to vector<64x64xf32>
    %108 = arith.mulf %106, %107 : vector<64x64xf32>
    %cst_39 = arith.constant 0.000000e+00 : f32
    %109 = vector.broadcast %cst_39 : f32 to vector<64x64xf32>
    %110 = arith.cmpf ogt, %108, %109 : vector<64x64xf32>
    %111 = math.exp %108 : vector<64x64xf32>
    %cst_40 = arith.constant 1.000000e+00 : f32
    %112 = vector.broadcast %cst_40 : f32 to vector<64x64xf32>
    %113 = arith.subf %111, %112 : vector<64x64xf32>
    %114 = arith.select %110, %108, %113 : vector<64x64xi1>, vector<64x64xf32>
    %c32_i32_41 = arith.constant 32 : i32
    %115 = vector.broadcast %c32_i32_41 : i32 to vector<1x64xi32>
    %116 = arith.cmpi sge, %10, %115 : vector<1x64xi32>
    %c48_i32 = arith.constant 48 : i32
    %117 = vector.broadcast %c48_i32 : i32 to vector<1x64xi32>
    %118 = arith.cmpi slt, %10, %117 : vector<1x64xi32>
    %119 = arith.andi %116, %118 : vector<1x64xi1>
    %120 = vector.shape_cast %119 : vector<1x64xi1> to vector<1x64xi1>
    %121 = vector.broadcast %120 : vector<1x64xi1> to vector<64x64xi1>
    %122 = arith.select %121, %114, %85 : vector<64x64xi1>, vector<64x64xf32>
    %123 = vector.extract_strided_slice %7 {offsets = [0, 3], sizes = [64, 1], strides = [1, 1]} : vector<64x4xf32> to vector<64x1xf32>
    %124 = vector.extract_strided_slice %9 {offsets = [3, 0], sizes = [1, 64], strides = [1, 1]} : vector<4x64xf32> to vector<1x64xf32>
    %125 = vector.broadcast %123 : vector<64x1xf32> to vector<64x64xf32>
    %126 = vector.broadcast %124 : vector<1x64xf32> to vector<64x64xf32>
    %127 = arith.addf %125, %126 : vector<64x64xf32>
    %cst_42 = arith.constant 0.000000e+00 : f32
    %128 = vector.broadcast %cst_42 : f32 to vector<64x64xf32>
    %129 = arith.cmpf ogt, %127, %128 : vector<64x64xf32>
    %cst_43 = arith.constant 2.000000e-01 : f32
    %130 = vector.broadcast %cst_43 : f32 to vector<64x64xf32>
    %131 = arith.mulf %130, %127 : vector<64x64xf32>
    %132 = arith.select %129, %127, %131 : vector<64x64xi1>, vector<64x64xf32>
    %cst_44 = arith.constant 0.000000e+00 : f32
    %133 = vector.broadcast %cst_44 : f32 to vector<64x64xf32>
    %134 = arith.subf %133, %132 : vector<64x64xf32>
    %135 = math.exp %134 : vector<64x64xf32>
    %cst_45 = arith.constant 0.000000e+00 : f32
    %136 = vector.broadcast %cst_45 : f32 to vector<64x64xf32>
    %137 = arith.select %3, %135, %136 : vector<64x64xi1>, vector<64x64xf32>
    %cst_46 = arith.constant dense<0.000000e+00> : vector<64xf32>
    %138 = vector.multi_reduction <add>, %137, %cst_46 [1] : vector<64x64xf32> to vector<64xf32>
    %139 = vector.shape_cast %138 : vector<64xf32> to vector<64x1xf32>
    %cst_47 = arith.constant 1.000000e-30 : f32
    %140 = vector.broadcast %cst_47 : f32 to vector<64x1xf32>
    %141 = arith.maximumf %139, %140 : vector<64x1xf32>
    %142 = tpu.reciprocal %141 {approx = true} : vector<64x1xf32> -> vector<64x1xf32>
    %cst_48 = arith.constant dense<0.000000e+00> : vector<64x64xf32>
    %143 = tpu.matmul %137, %5, %cst_48 {dimension_numbers = #tpu.dot_dimension_numbers<[1], [0], [0], [1], [0, 0, 1, 1], [], []>} : vector<64x64xf32>, vector<64x64xf32>, vector<64x64xf32> -> vector<64x64xf32>
    %144 = vector.broadcast %142 : vector<64x1xf32> to vector<64x64xf32>
    %145 = arith.mulf %143, %144 : vector<64x64xf32>
    %cst_49 = arith.constant 0.000000e+00 : f32
    %146 = vector.broadcast %cst_49 : f32 to vector<64x64xf32>
    %147 = arith.cmpf ogt, %145, %146 : vector<64x64xf32>
    %148 = math.exp %145 : vector<64x64xf32>
    %cst_50 = arith.constant 1.000000e+00 : f32
    %149 = vector.broadcast %cst_50 : f32 to vector<64x64xf32>
    %150 = arith.subf %148, %149 : vector<64x64xf32>
    %151 = arith.select %147, %145, %150 : vector<64x64xi1>, vector<64x64xf32>
    %c48_i32_51 = arith.constant 48 : i32
    %152 = vector.broadcast %c48_i32_51 : i32 to vector<1x64xi32>
    %153 = arith.cmpi sge, %10, %152 : vector<1x64xi32>
    %c64_i32 = arith.constant 64 : i32
    %154 = vector.broadcast %c64_i32 : i32 to vector<1x64xi32>
    %155 = arith.cmpi slt, %10, %154 : vector<1x64xi32>
    %156 = arith.andi %153, %155 : vector<1x64xi1>
    %157 = vector.shape_cast %156 : vector<1x64xi1> to vector<1x64xi1>
    %158 = vector.broadcast %157 : vector<1x64xi1> to vector<64x64xi1>
    %159 = arith.select %158, %151, %122 : vector<64x64xi1>, vector<64x64xf32>
    %c0_52 = arith.constant 0 : index
    %c0_53 = arith.constant 0 : index
    %160 = vector.load %arg5[%c0_52, %c0_53] : memref<64x8xf32, #tpu.memory_space<vmem>>, vector<64x8xf32>
    %cst_54 = arith.constant dense<0.000000e+00> : vector<64x8xf32>
    %161 = tpu.matmul %159, %160, %cst_54 {dimension_numbers = #tpu.dot_dimension_numbers<[1], [0], [0], [1], [0, 0, 1, 1], [], []>} : vector<64x64xf32>, vector<64x8xf32>, vector<64x8xf32> -> vector<64x8xf32>
    %c0_55 = arith.constant 0 : index
    %c0_56 = arith.constant 0 : index
    %162 = vector.load %arg6[%c0_55, %c0_56] : memref<1x8xf32, #tpu.memory_space<vmem>>, vector<1x8xf32>
    %cst_57 = arith.constant dense<0.000000e+00> : vector<64x1xf32>
    %163 = tpu.matmul %161, %162, %cst_57 {dimension_numbers = #tpu.dot_dimension_numbers<[1], [1], [0], [0], [0, 0, 1, 0], [], []>} : vector<64x8xf32>, vector<1x8xf32>, vector<64x1xf32> -> vector<64x1xf32>
    %c0_58 = arith.constant 0 : index
    %c0_59 = arith.constant 0 : index
    %164 = vector.load %arg7[%c0_58, %c0_59] : memref<1x8xf32, #tpu.memory_space<vmem>>, vector<1x8xf32>
    %cst_60 = arith.constant dense<0.000000e+00> : vector<1x64xf32>
    %165 = tpu.matmul %164, %161, %cst_60 {dimension_numbers = #tpu.dot_dimension_numbers<[1], [1], [0], [0], [0, 0, 1, 0], [], []>} : vector<1x8xf32>, vector<64x8xf32>, vector<1x64xf32> -> vector<1x64xf32>
    %166 = vector.broadcast %163 : vector<64x1xf32> to vector<64x64xf32>
    %167 = vector.broadcast %165 : vector<1x64xf32> to vector<64x64xf32>
    %168 = arith.addf %166, %167 : vector<64x64xf32>
    %cst_61 = arith.constant 0.000000e+00 : f32
    %169 = vector.broadcast %cst_61 : f32 to vector<64x64xf32>
    %170 = arith.cmpf ogt, %168, %169 : vector<64x64xf32>
    %cst_62 = arith.constant 2.000000e-01 : f32
    %171 = vector.broadcast %cst_62 : f32 to vector<64x64xf32>
    %172 = arith.mulf %171, %168 : vector<64x64xf32>
    %173 = arith.select %170, %168, %172 : vector<64x64xi1>, vector<64x64xf32>
    %cst_63 = arith.constant 0.000000e+00 : f32
    %174 = vector.broadcast %cst_63 : f32 to vector<64x64xf32>
    %175 = arith.subf %174, %173 : vector<64x64xf32>
    %176 = math.exp %175 : vector<64x64xf32>
    %cst_64 = arith.constant 0.000000e+00 : f32
    %177 = vector.broadcast %cst_64 : f32 to vector<64x64xf32>
    %178 = arith.select %3, %176, %177 : vector<64x64xi1>, vector<64x64xf32>
    %cst_65 = arith.constant dense<0.000000e+00> : vector<64xf32>
    %179 = vector.multi_reduction <add>, %178, %cst_65 [1] : vector<64x64xf32> to vector<64xf32>
    %180 = vector.shape_cast %179 : vector<64xf32> to vector<64x1xf32>
    %cst_66 = arith.constant 1.000000e-30 : f32
    %181 = vector.broadcast %cst_66 : f32 to vector<64x1xf32>
    %182 = arith.maximumf %180, %181 : vector<64x1xf32>
    %183 = tpu.reciprocal %182 {approx = true} : vector<64x1xf32> -> vector<64x1xf32>
    %cst_67 = arith.constant dense<0.000000e+00> : vector<64x8xf32>
    %184 = tpu.matmul %178, %161, %cst_67 {dimension_numbers = #tpu.dot_dimension_numbers<[1], [0], [0], [1], [0, 0, 1, 1], [], []>} : vector<64x64xf32>, vector<64x8xf32>, vector<64x8xf32> -> vector<64x8xf32>
    %185 = vector.broadcast %183 : vector<64x1xf32> to vector<64x8xf32>
    %186 = arith.mulf %184, %185 : vector<64x8xf32>
    %cst_68 = arith.constant 0.000000e+00 : f32
    %187 = vector.broadcast %cst_68 : f32 to vector<64x8xf32>
    %188 = arith.cmpf ogt, %186, %187 : vector<64x8xf32>
    %189 = math.exp %186 : vector<64x8xf32>
    %cst_69 = arith.constant 1.000000e+00 : f32
    %190 = vector.broadcast %cst_69 : f32 to vector<64x8xf32>
    %191 = arith.subf %189, %190 : vector<64x8xf32>
    %192 = arith.select %188, %186, %191 : vector<64x8xi1>, vector<64x8xf32>
    %cst_70 = arith.constant dense<0xFF800000> : vector<64xf32>
    %193 = vector.multi_reduction <maximumf>, %192, %cst_70 [1] : vector<64x8xf32> to vector<64xf32>
    %194 = vector.shape_cast %193 : vector<64xf32> to vector<64x1xf32>
    %195 = vector.broadcast %194 : vector<64x1xf32> to vector<64x8xf32>
    %196 = arith.subf %192, %195 : vector<64x8xf32>
    %197 = math.exp %196 : vector<64x8xf32>
    %cst_71 = arith.constant dense<0.000000e+00> : vector<64xf32>
    %198 = vector.multi_reduction <add>, %197, %cst_71 [1] : vector<64x8xf32> to vector<64xf32>
    %199 = vector.shape_cast %198 : vector<64xf32> to vector<64x1xf32>
    %200 = math.log %199 : vector<64x1xf32>
    %201 = arith.addf %194, %200 : vector<64x1xf32>
    %202 = vector.broadcast %201 : vector<64x1xf32> to vector<64x8xf32>
    %203 = arith.subf %192, %202 : vector<64x8xf32>
    %c0_72 = arith.constant 0 : index
    %c0_73 = arith.constant 0 : index
    %204 = vector.load %arg8[%c0_72, %c0_73] : memref<64x8xf32, #tpu.memory_space<vmem>>, vector<64x8xf32>
    tpu.vector_store %arg8[%c0_72, %c0_73], %203 {strides = array<i32>} : memref<64x8xf32, #tpu.memory_space<vmem>>, vector<64x8xf32>,
    return
  }
}

</mosaic_0001>

<bundles_post_ra>
// kernel: tpu_custom_call.1
= control target key start
LH: loop header
LB: loop body
LE: loop exit
PB: predicated region body
PF: predicated region fallthrough
CT: control target
= control target key end

     0   :  { %vm57_vm0 = vcmask 261120   ;;  %vm188_vm1 = vcmask 523264   ;;  %v3339_v15 = vmov 0.0|0.0   ;;  %v3340_v16 = vmov 1   ;;  %s4444_s1 = inlined_call_operand.vmem [shape: f32[32,64], index: 1, kind: input, shape index: {}]   ;;  %s4445_s0 = inlined_call_operand.vmem [shape: f32[64,32], index: 0, kind: input, shape index: {}]   ;;  %s4446_s2 = inlined_call_operand.vmem [shape: f32[4,64], index: 2, kind: input, shape index: {}]   ;;  %s4447_s3 = inlined_call_operand.vmem [shape: f32[4,64], index: 3, kind: input, shape index: {}]   ;;  %s4448_s4 = inlined_call_operand.vmem [shape: f32[64,64], index: 4, kind: input, shape index: {}]   ;;  %s4449_s5 = inlined_call_operand.vmem [shape: f32[64,8], index: 5, kind: input, shape index: {}]   ;;  %s4450_s6 = inlined_call_operand.vmem [shape: f32[1,8], index: 6, kind: input, shape index: {}]   ;;  %s4451_s7 = inlined_call_operand.vmem [shape: f32[1,8], index: 7, kind: input, shape index: {}]   ;;  %s4452_s8 = inlined_call_operand.vmem [shape: f32[64,8], index: 8, kind: output, shape index: {}]  }
   0x1   :  { %v53_v0 = vld [vmem:[%s4444_s1] sm:$0xff]  ;;  %v54_v1 = vld [vmem:[%s4444_s1 + $0x8] sm:$0xff]  ;;  %v55_v2 = vld [vmem:[%s4444_s1 + $0x10] sm:$0xff]  ;;  %3044 = vset.pattern.permute.xlu1 %v3340_v16  ;;  %v3341_v17 = vmov 0   ;;  %vm3342_vm3 = vmmov 0   ;;  %v3343_v31 = vmov 0.0   ;;  %v395_v45 = vlaneseq }
   0x2   :  { %v2900_v3 = vpack.c.bf16 %v54_v1, %v53_v0  ;;  %v56_v4 = vld [vmem:[%s4444_s1 + $0x18] sm:$0xff]  ;;  %v29_v5 = vld [vmem:[%s4445_s0] sm:$0xff]  ;;  %v30_v8 = vld [vmem:[%s4445_s0 + $0x8] sm:$0xff]  ;;  %3043 = vset.pattern.permute.xlu0 %v3341_v17  ;;  %v3344_v43 = vmov 2   ;;  %v3345_v44 = vmov 3  }
   0x3   :  { %v2904_v6 = vpack.c.bf16 %v56_v4, %v55_v2  ;;  %2668 = vmatprep.mubr.msk.f32.mxu0 %vm57_vm0, %v29_v5  ;;  %v187_v7 = vld [vmem:[%s4446_s2] sm:$0xf]  ;;  %v31_v9 = vld [vmem:[%s4445_s0 + $0x10] sm:$0xff]  ;;  %v32_v10 = vld [vmem:[%s4445_s0 + $0x18] sm:$0xff]  ;;  %v3515_v46 = vshrl.u32 %v395_v45, 7 }
   0x4   :  { %2901 = vmatprep.subr.bf16.mxu0 %v2900_v3  ;;  %2680 = vmatprep.subr.msk.mxu1 %vm188_vm1, %v187_v7  ;;  %v33_v11 = vld [vmem:[%s4445_s0 + $0x20] sm:$0xff]  ;;  %v34_v12 = vld [vmem:[%s4445_s0 + $0x28] sm:$0xff]  ;;  %v35_v13 = vld [vmem:[%s4445_s0 + $0x30] sm:$0xff] }
   0x5   :  { %2903 = vmatpush3.bf16.msra.mxu0 %v2900_v3  ;;  %2681 = vmatpush3.xpose.msk.msra.mxu1 %vm188_vm1, %v187_v7  ;;  %v36_v14 = vld [vmem:[%s4445_s0 + $0x38] sm:$0xff]  ;;  %vm3445_vm2 = vmpackc.low %vm188_vm1, %vm188_vm1  ;;  %v321_v32 = vld [vmem:[%s4447_s3] sm:$0xf]  ;;  %v439_v47 = vsub.s32 0, %v3515_v46  ;;  %v769_v48 = vsub.s32 1, %v3515_v46 }
   0x6   :  { %2905 = vmatprep.subr.bf16.mxu0 %v2904_v6  ;;  %2908 = vmatprep.subr.bf16.mxu1 %v3339_v15 }
   0x9   :  { %2907 = vmatpush3.bf16.msra.mxu0 %v2904_v6 }
   0xc   :  { %2669 = vmatmul.mubr.msk.f32.vlgmr.msra.gmra.mrb[0].mxu0 %vm57_vm0, %v30_v8 }
   0xd   :  { %2671 = vmatprep.mubr.msk.f32.mxu0 %vm57_vm0, %v31_v9 }
  0x10   :  { %2672 = vmatmul.mubr.msk.f32.gmra.mrb[2].mxu0 %vm57_vm0, %v32_v10 }
  0x11   :  { %2674 = vmatprep.mubr.msk.f32.mxu0 %vm57_vm0, %v33_v11 }
  0x14   :  { %2675 = vmatmul.mubr.msk.f32.gmra.mrb[4].mxu0 %vm57_vm0, %v34_v12 }
  0x15   :  { %2677 = vmatprep.mubr.msk.f32.mxu0 %vm57_vm0, %v35_v13 }
  0x18   :  { %2678 = vmatmul.mubr.msk.f32.gmra.mrb[6].mxu0 %vm57_vm0, %v36_v14 }
  0xdf   :  { %v2670_v18 = vpop.f32.mrb[0].mxu0 }
  0xe0   :  { %v148_v19 = vpop.f32.mrb[1].mxu0 }
  0xe1   :  { %v3449_v21 = vpack.c.bf16 %v2670_v18, %v148_v19  ;;  %2682 = vmatprep.mubr.msk.f32.mxu1 %vm188_vm1, %v148_v19 }
  0xe2   :  { %2683 = vmatmul.mubr.msk.f32.vlgmr.msra.gmra.mrb[0].mxu1 %vm188_vm1, %v2670_v18 }
  0xe3   :  { %v2673_v22 = vpop.f32.mrb[2].mxu0  ;;  %2911 = vmatpush3.bf16.xpose.msk.msra.mxu1 %vm3445_vm2, %v3449_v21  ;;  %2925 = vmatprep.subr.bf16.mxu0 %v3449_v21 }
  0xe4   :  { %v158_v23 = vpop.f32.mrb[3].mxu0  ;;  %2927 = vmatpush3.bf16.msra.mxu0 %v3449_v21  ;;  %2912 = vmatprep.subr.bf16.mxu1 %v3339_v15 }
  0xe5   :  { %v3459_v24 = vpack.c.bf16 %v2673_v22, %v158_v23  ;;  %2685 = vmatprep.mubr.msk.f32.mxu1 %vm188_vm1, %v158_v23 }
  0xe6   :  { %2686 = vmatmul.mubr.msk.f32.gmra.mrb[2].mxu1 %vm188_vm1, %v2673_v22 }
  0xe7   :  { %v2676_v25 = vpop.f32.mrb[4].mxu0  ;;  %2929 = vmatprep.subr.bf16.mxu0 %v3459_v24 }
  0xe8   :  { %v168_v26 = vpop.f32.mrb[5].mxu0  ;;  %2931 = vmatpush3.bf16.msra.mxu0 %v3459_v24 }
  0xe9   :  { %v3465_v27 = vpack.c.bf16 %v2676_v25, %v168_v26  ;;  %2688 = vmatprep.mubr.msk.f32.mxu1 %vm188_vm1, %v168_v26  ;;  %v3537_v26 = vld [vmem:[%s4448_s4 + $0x8] sm:$0xff] }
  0xea   :  { %2689 = vmatmul.mubr.msk.f32.gmra.mrb[4].mxu1 %vm188_vm1, %v2676_v25  ;;  %vm46_vm10 = vcmp.gt.f32.partialorder %v3537_v26, 0.0 }
  0xeb   :  { %v2679_v28 = vpop.f32.mrb[6].mxu0  ;;  %2915 = vmatpush3.bf16.xpose.msk.msra.mxu1 %vm3445_vm2, %v3459_v24  ;;  %2933 = vmatprep.subr.bf16.mxu0 %v3465_v27 }
  0xec   :  { %v178_v29 = vpop.f32.mrb[7].mxu0  ;;  %2935 = vmatpush3.bf16.msra.mxu0 %v3465_v27  ;;  %2916 = vmatprep.subr.bf16.mxu1 %v3339_v15 }
  0xed   :  { %v3475_v30 = vpack.c.bf16 %v2679_v28, %v178_v29  ;;  %2691 = vmatprep.mubr.msk.f32.mxu1 %vm188_vm1, %v178_v29 }
  0xee   :  { %2692 = vmatmul.mubr.msk.f32.gmra.mrb[6].mxu1 %vm188_vm1, %v2679_v28 }
  0xef   :  { %2937 = vmatprep.subr.bf16.mxu0 %v3475_v30  ;;  %2710 = vmatprep.mubr.msk.f32.mxu1 %vm3342_vm3, %v3343_v31 }
  0xf0   :  { %2939 = vmatpush3.bf16.msra.mxu0 %v3475_v30 }
  0xf1   :  { %2941 = vmatprep.subr.bf16.mxu0 %v3449_v21 }
  0xf3   :  { %2919 = vmatpush3.bf16.xpose.msk.msra.mxu1 %vm3445_vm2, %v3465_v27 }
  0xf4   :  { %2920 = vmatprep.subr.bf16.mxu1 %v3339_v15 }
  0xfb   :  { %2923 = vmatpush3.bf16.xpose.msk.msra.mxu1 %vm3445_vm2, %v3475_v30 }
  0xfc   :  { %2957 = vmatprep.subr.bf16.mxu1 %v3449_v21 }
 0x102   :  { %2711 = vmatmul.mubr.msk.f32.vlgmr.msra.gmra.mrb[8].mxu1 %vm188_vm1, %v321_v32 }
 0x103   :  { %2959 = vmatpush3.bf16.msra.mxu1 %v3449_v21 }
 0x104   :  { %2961 = vmatprep.subr.bf16.mxu1 %v3459_v24 }
 0x107   :  { %2963 = vmatpush3.bf16.msra.mxu1 %v3459_v24 }
 0x108   :  { %2965 = vmatprep.subr.bf16.mxu1 %v3465_v27 }
 0x10b   :  { %2967 = vmatpush3.bf16.msra.mxu1 %v3465_v27 }
 0x10c   :  { %2969 = vmatprep.subr.bf16.mxu1 %v3475_v30 }
 0x10f   :  { %2971 = vmatpush3.bf16.msra.mxu1 %v3475_v30 }
 0x1b5   :  { %v2684_v33 = vpop.f32.mrb[0].mxu1 }
 0x1b6   :  { %740 = vperm.xlu1 %3044, %v2684_v33   ;;  %404 = vperm.xlu0 %3043, %v2684_v33   ;;  %v282_v34 = vpop.f32.mrb[1].mxu1 }
 0x1b9   :  { %v2687_v35 = vpop.f32.mrb[2].mxu1 }
 0x1ba   :  { %3046 = vset.pattern.permute.xlu1 %v3341_v17  ;;  %399 = vperm.xlu0 %3043, %v282_v34   ;;  %v292_v36 = vpop.f32.mrb[3].mxu1 }
 0x1bb   :  { %414 = vperm.xlu1 %3046, %v2687_v35  }
 0x1bd   :  { %v2690_v37 = vpop.f32.mrb[4].mxu1 }
 0x1be   :  { %3045 = vset.pattern.permute.xlu0 %v3340_v16  ;;  %v302_v38 = vpop.f32.mrb[5].mxu1 }
 0x1bf   :  { %736 = vperm.xlu0 %3045, %v282_v34   ;;  %409 = vperm.xlu1 %3046, %v292_v36  }
 0x1c1   :  { %v2693_v39 = vpop.f32.mrb[6].mxu1 }
 0x1c2   :  { %v312_v40 = vpop.f32.mrb[7].mxu1 }
 0x1c3   :  { %748 = vperm.xlu0 %3045, %v2687_v35   ;;  %3047 = vset.pattern.permute.xlu1 %v3340_v16 }
 0x1c4   :  { %744 = vperm.xlu1 %3047, %v292_v36  }
 0x1c7   :  { %756 = vperm.xlu0 %3045, %v2690_v37  }
 0x1c8   :  { %3048 = vset.pattern.permute.xlu1 %v3341_v17 }
 0x1c9   :  { %424 = vperm.xlu1 %3048, %v2690_v37  }
 0x1cb   :  { %3049 = vset.pattern.permute.xlu0 %v3341_v17 }
 0x1cc   :  { %419 = vperm.xlu0 %3049, %v302_v38  }
 0x1cd   :  { %3050 = vset.pattern.permute.xlu1 %v3340_v16 }
 0x1ce   :  { %752 = vperm.xlu1 %3050, %v302_v38  }
 0x1d0   :  { %429 = vperm.xlu0 %3049, %v312_v40  }
 0x1d2   :  { %3051 = vset.pattern.permute.xlu1 %v3341_v17 }
 0x1d3   :  { %434 = vperm.xlu1 %3051, %v2693_v39  }
 0x1d4   :  { %3052 = vset.pattern.permute.xlu0 %v3340_v16 }
 0x1d5   :  { %764 = vperm.xlu0 %3052, %v2693_v39   ;;  %v3511_v41 = vpop.f32.mrb[8].mxu1 }
 0x1d6   :  { %v2712_v42 = vpop.f32.mrb[9].mxu1  ;;  %v3522_v49 = vrot.slane %v3511_v41, %v439_v47  ;;  %v3525_v50 = vrot.slane %v3511_v41, %v769_v48 }
 0x1d7   :  { %3053 = vset.pattern.permute.xlu1 %v3344_v43 }
 0x1d8   :  { %1066 = vperm.xlu1 %3053, %v282_v34  }
 0x1d9   :  { %3054 = vset.pattern.permute.xlu0 %v3344_v43 }
 0x1da   :  { %1070 = vperm.xlu0 %3054, %v2684_v33  }
 0x1dc   :  { %3055 = vset.pattern.permute.xlu1 %v3345_v44 }
 0x1dd   :  { %1396 = vperm.xlu1 %3055, %v282_v34  }
 0x1de   :  { %1074 = vperm.xlu0 %3054, %v292_v36  }
 0x1e1   :  { %3056 = vset.pattern.permute.xlu1 %v3340_v16 }
 0x1e2   :  { %760 = vperm.xlu1 %3056, %v312_v40   ;;  %3059 = vset.pattern.permute.xlu0 %v3345_v44 }
 0x1e3   :  { %1404 = vperm.xlu0 %3059, %v292_v36  }
 0x1e6   :  { %3057 = vset.pattern.permute.xlu1 %v3345_v44 }
 0x1e7   :  { %1400 = vperm.xlu1 %3057, %v2684_v33   ;;  %3062 = vset.pattern.permute.xlu0 %v3344_v43 }
 0x1e8   :  { %1086 = vperm.xlu0 %3062, %v2690_v37  }
 0x1eb   :  { %3058 = vset.pattern.permute.xlu1 %v3344_v43 }
 0x1ec   :  { %1078 = vperm.xlu1 %3058, %v2687_v35   ;;  %1090 = vperm.xlu0 %3062, %v312_v40  }
 0x1f0   :  { %3060 = vset.pattern.permute.xlu1 %v3345_v44  ;;  %3065 = vset.pattern.permute.xlu0 %v3345_v44 }
 0x1f1   :  { %1408 = vperm.xlu1 %3060, %v2687_v35   ;;  %1420 = vperm.xlu0 %3065, %v312_v40  }
 0x1f5   :  { %3061 = vset.pattern.permute.xlu1 %v3344_v43 }
 0x1f6   :  { %1082 = vperm.xlu1 %3061, %v302_v38  }
 0x1fa   :  { %3063 = vset.pattern.permute.xlu1 %v3345_v44 }
 0x1fb   :  { %1412 = vperm.xlu1 %3063, %v302_v38  }
 0x1ff   :  { %1416 = vperm.xlu1 %3063, %v2690_v37   ;;  %v3544_v37 = vld [vmem:[%s4448_s4] sm:$0xff] }
 0x200   :  { %vm45_vm13 = vcmp.gt.f32.partialorder %v3544_v37, 0.0 }
 0x203   :  { %3064 = vset.pattern.permute.xlu1 %v3344_v43 }
 0x204   :  { %1094 = vperm.xlu1 %3064, %v2693_v39  }
 0x208   :  { %3066 = vset.pattern.permute.xlu1 %v3345_v44 }
 0x209   :  { %1424 = vperm.xlu1 %3066, %v2693_v39  }
 0x235   :  { %v741_v51 = vpop.permute.xlu1 %740  ;;  %v405_v52 = vpop.permute.xlu0 %404 }
 0x236   :  { %v772_v53 = vadd.f32 %v3525_v50, %v741_v51  ;;  %v442_v54 = vadd.f32 %v3522_v49, %v405_v52 }
 0x238   :  { %vm780_vm4 = vcmp.gt.f32.partialorder %v772_v53, 0.0  ;;  %v788_v55 = vmul.f32 0.2, %v772_v53  ;;  %vm450_vm5 = vcmp.gt.f32.partialorder %v442_v54, 0.0  ;;  %v458_v56 = vmul.f32 0.2, %v442_v54 }
 0x239   :  { %v400_v57 = vpop.permute.xlu0 %399 }
 0x23a   :  { %v796_v58 = vsel %vm780_vm4, %v772_v53, %v788_v55  ;;  %v466_v59 = vsel %vm450_vm5, %v442_v54, %v458_v56  ;;  %v441_v60 = vadd.f32 %v3522_v49, %v400_v57  ;;  %v415_v61 = vpop.permute.xlu1 %414  ;;  %v3561_v54 = vld [vmem:[%s4448_s4 + $0x18] sm:$0xff] }
 0x23b   :  { %v804_v62 = vsub.f32 0.0, %v796_v58  ;;  %v474_v63 = vsub.f32 0.0, %v466_v59  ;;  %v444_v0 = vadd.f32 %v3522_v49, %v415_v61  ;;  %v3571_v61 = vld [vmem:[%s4448_s4 + $0x10] sm:$0xff]  ;;  %vm48_vm0 = vcmp.gt.f32.partialorder %v3561_v54, 0.0 }
 0x23c   :  { %vm449_vm6 = vcmp.gt.f32.partialorder %v441_v60, 0.0  ;;  %v457_v1 = vmul.f32 0.2, %v441_v60  ;;  %vm47_vm2 = vcmp.gt.f32.partialorder %v3571_v61, 0.0 }
 0x23d   :  { %v813_v2 = vmul.f32 1.442695, %v804_v62  ;;  %v483_v3 = vmul.f32 1.442695, %v474_v63  ;;  %vm452_vm7 = vcmp.gt.f32.partialorder %v444_v0, 0.0  ;;  %v1099_v62 = vsub.s32 2, %v3515_v46 }
 0x23e   :  { %v465_v4 = vsel %vm449_vm6, %v441_v60, %v457_v1  ;;  %v460_v5 = vmul.f32 0.2, %v444_v0  ;;  %v737_v6 = vpop.permute.xlu0 %736  ;;  %v410_v7 = vpop.permute.xlu1 %409 }
 0x23f   :  { %3067 = vpow2.f32 %v813_v2  ;;  %v473_v8 = vsub.f32 0.0, %v465_v4  ;;  %v771_v9 = vadd.f32 %v3525_v50, %v737_v6  ;;  %v443_v10 = vadd.f32 %v3522_v49, %v410_v7 }
 0x240   :  { %3069 = vpow2.f32 %v483_v3  ;;  %v468_v11 = vsel %vm452_vm7, %v444_v0, %v460_v5 }
 0x241   :  { %v481_v12 = vmul.f32 1.442695, %v473_v8  ;;  %v476_v13 = vsub.f32 0.0, %v468_v11  ;;  %vm779_vm8 = vcmp.gt.f32.partialorder %v771_v9, 0.0  ;;  %v787_v14 = vmul.f32 0.2, %v771_v9 }
 0x242   :  { %vm451_vm9 = vcmp.gt.f32.partialorder %v443_v10, 0.0  ;;  %v459_v16 = vmul.f32 0.2, %v443_v10  ;;  %v749_v17 = vpop.permute.xlu0 %748 }
 0x243   :  { %3071 = vpow2.f32 %v481_v12  ;;  %v487_v18 = vmul.f32 1.442695, %v476_v13  ;;  %v795_v19 = vsel %vm779_vm8, %v771_v9, %v787_v14  ;;  %v745_v20 = vpop.permute.xlu1 %744  ;;  %v774_v25 = vadd.f32 %v3525_v50, %v749_v17 }
 0x244   :  { %v803_v22 = vsub.f32 0.0, %v795_v19  ;;  %v467_v23 = vsel %vm451_vm9, %v443_v10, %v459_v16  ;;  %v773_v29 = vadd.f32 %v3525_v50, %v745_v20 }
 0x245   :  { %v475_v28 = vsub.f32 0.0, %v467_v23  ;;  %3073 = vpow2.f32 %v487_v18  ;;  %v790_v35 = vmul.f32 0.2, %v774_v25  ;;  %vm782_vm11 = vcmp.gt.f32.partialorder %v774_v25, 0.0 }
 0x246   :  { %v811_v32 = vmul.f32 1.442695, %v803_v22  ;;  %v757_v33 = vpop.permute.xlu0 %756  ;;  %v789_v39 = vmul.f32 0.2, %v773_v29  ;;  %vm781_vm12 = vcmp.gt.f32.partialorder %v773_v29, 0.0 }
 0x247   :  { %v485_v34 = vmul.f32 1.442695, %v475_v28  ;;  %v3556_v52 = vsel %vm782_vm11, %v774_v25, %v790_v35  ;;  %v776_v57 = vadd.f32 %v3525_v50, %v757_v33  ;;  %v1429_v35 = vsub.s32 3, %v3515_v46 }
 0x248   :  { %3075 = vpow2.f32 %v811_v32  ;;  %v425_v36 = vpop.permute.xlu1 %424  ;;  %v3563_v56 = vsel %vm781_vm12, %v773_v29, %v789_v39  ;;  %v806_v6 = vsub.f32 0.0, %v3556_v52 }
 0x249   :  { %v3068_v38 = vpop.eup %3067  ;;  %3077 = vpow2.f32 %v485_v34  ;;  %v446_v42 = vadd.f32 %v3522_v49, %v425_v36  ;;  %v805_v7 = vsub.f32 0.0, %v3563_v56  ;;  %vm784_vm4 = vcmp.gt.f32.partialorder %v776_v57, 0.0 }
 0x24a   :  { %v3070_v40 = vpop.eup %3069  ;;  %v3549_v43 = vsel %vm46_vm10, %v3068_v38, 0.0  ;;  %v792_v9 = vmul.f32 0.2, %v776_v57  ;;  %v3608_v34 = vrot.slane %v3511_v41, %v1099_v62  ;;  %v3617_v38 = vld [vmem:[%s4448_s4 + $0x28] sm:$0xff]  ;;  %v817_v56 = vmul.f32 1.442695, %v806_v6 }
 0x24b   :  { %v420_v44 = vpop.permute.xlu0 %419  ;;  %v838_v48 = vsel %vm188_vm1, %v3549_v43, 0.0  ;;  %v498_v51 = vsel %vm46_vm10, %v3070_v40, 0.0  ;;  %vm454_vm14 = vcmp.gt.f32.partialorder %v446_v42, 0.0  ;;  %v462_v53 = vmul.f32 0.2, %v446_v42 }
 0x24c   :  { %839 = vadd.xlane.f32.xlu1 %v838_v48  ;;  %v445_v58 = vadd.f32 %v3522_v49, %v420_v44  ;;  %v508_v59 = vsel %vm188_vm1, %v498_v51, 0.0  ;;  %v800_v44 = vsel %vm784_vm4, %v776_v57, %v792_v9  ;;  %vm4455_vm8 = vcmp.gt.f32.partialorder %v3617_v38, 0.0 }
 0x24d   :  { %v3072_v55 = vpop.eup %3071  ;;  %v753_v60 = vpop.permute.xlu1 %752  ;;  %v470_v63 = vsel %vm454_vm14, %v446_v42, %v462_v53  ;;  %509 = vadd.xlane.f32.xlu0 %v508_v59  ;;  %v3626_v53 = vld [vmem:[%s4448_s4 + $0x20] sm:$0xff] }
 0x24e   :  { %v775_v0 = vadd.f32 %v3525_v50, %v753_v60  ;;  %v3577_v1 = vsel %vm45_vm13, %v3072_v55, 0.0  ;;  %v478_v2 = vsub.f32 0.0, %v470_v63  ;;  %vm453_vm15 = vcmp.gt.f32.partialorder %v445_v58, 0.0  ;;  %v3631_v55 = vld [vmem:[%s4448_s4 + $0x30] sm:$0xff] }
 0x24f   :  { %v461_v3 = vmul.f32 0.2, %v445_v58  ;;  %v430_v4 = vpop.permute.xlu0 %429  ;;  %2729 = vmatprep.mubr.msk.f32.mxu0 %vm188_vm1, %v3577_v1  ;;  %v3074_v5 = vpop.eup %3073  ;;  %v3636_v60 = vrot.slane %v3511_v41, %v1429_v35  ;;  %vm4456_vm12 = vcmp.gt.f32.partialorder %v3626_v53, 0.0  ;;  %vm4454_vm14 = vcmp.gt.f32.partialorder %v3631_v55, 0.0 }
 0x250   :  { %v447_v8 = vadd.f32 %v3522_v49, %v430_v4  ;;  %2730 = vmatmul.mubr.msk.f32.vlgmr.msra.gmra.mrb[8].mxu0 %vm188_vm1, %v498_v51  ;;  %v491_v10 = vmul.f32 1.442695, %v478_v2  ;;  %vm783_vm5 = vcmp.gt.f32.partialorder %v775_v0, 0.0  ;;  %v791_v18 = vmul.f32 0.2, %v775_v0 }
 0x251   :  { %v469_v11 = vsel %vm453_vm15, %v445_v58, %v461_v3  ;;  %2943 = vmatpush3.bf16.msra.mxu0 %v3449_v21  ;;  %v3596_v22 = vsel %vm48_vm0, %v3074_v5, 0.0  ;;  %v815_v58 = vmul.f32 1.442695, %v805_v7  ;;  %v808_v2 = vsub.f32 0.0, %v800_v44 }
 0x252   :  { %v3076_v12 = vpop.eup %3075  ;;  %v477_v13 = vsub.f32 0.0, %v469_v11  ;;  %vm455_vm6 = vcmp.gt.f32.partialorder %v447_v8, 0.0  ;;  %v463_v14 = vmul.f32 0.2, %v447_v8  ;;  %2945 = vmatprep.subr.bf16.mxu0 %v3459_v24  ;;  %v435_v16 = vpop.permute.xlu1 %434  ;;  %3079 = vpow2.f32 %v491_v10 }
 0x253   :  { %v3078_v17 = vpop.eup %3077  ;;  %v448_v19 = vadd.f32 %v3522_v49, %v435_v16  ;;  %v3592_v20 = vsel %vm45_vm13, %v3076_v12, 0.0  ;;  %v799_v48 = vsel %vm783_vm5, %v775_v0, %v791_v18  ;;  %v3642_v0 = vld [vmem:[%s4448_s4 + $0x38] sm:$0xff] }
 0x254   :  { %v489_v23 = vmul.f32 1.442695, %v477_v13  ;;  %v471_v25 = vsel %vm455_vm6, %v447_v8, %v463_v14  ;;  %v765_v28 = vpop.permute.xlu0 %764  ;;  %v3600_v29 = vsel %vm47_vm2, %v3078_v17, 0.0  ;;  %v835_v32 = vsel %vm188_vm1, %v3592_v20, 0.0 }
 0x255   :  { %v479_v49 = vsub.f32 0.0, %v471_v25  ;;  %vm456_vm7 = vcmp.gt.f32.partialorder %v448_v19, 0.0  ;;  %v464_v33 = vmul.f32 0.2, %v448_v19  ;;  %2732 = vmatprep.mubr.msk.f32.mxu0 %vm188_vm1, %v3600_v29  ;;  %2947 = vmatpush3.bf16.msra.mxu0 %v3459_v24  ;;  %v778_v36 = vadd.f32 %v3525_v50, %v765_v28 }
 0x256   :  { %3081 = vpow2.f32 %v489_v23  ;;  %836 = vadd.xlane.f32.xlu0 %v835_v32  ;;  %2733 = vmatmul.mubr.msk.f32.gmra.mrb[10].mxu0 %vm188_vm1, %v3596_v22  ;;  %v807_v3 = vsub.f32 0.0, %v799_v48  ;;  %vm4453_vm4 = vcmp.gt.f32.partialorder %v3642_v0, 0.0  ;;  %v821_v13 = vmul.f32 1.442695, %v808_v2 }
 0x257   :  { %v493_v39 = vmul.f32 1.442695, %v479_v49  ;;  %v472_v40 = vsel %vm456_vm7, %v448_v19, %v464_v33  ;;  %2949 = vmatprep.subr.bf16.mxu0 %v3465_v27  ;;  %v1067_v42 = vpop.permute.xlu1 %1066  ;;  %v794_v59 = vmul.f32 0.2, %v778_v36  ;;  %vm786_vm11 = vcmp.gt.f32.partialorder %v778_v36, 0.0 }
 0x258   :  { %v480_v51 = vsub.f32 0.0, %v472_v40  ;;  %v1101_v52 = vadd.f32 %v3608_v34, %v1067_v42  ;;  %v819_v14 = vmul.f32 1.442695, %v807_v3 }
 0x259   :  { %3083 = vpow2.f32 %v493_v39  ;;  %2951 = vmatpush3.bf16.msra.mxu0 %v3465_v27  ;;  %v1071_v57 = vpop.permute.xlu0 %1070  ;;  %v802_v9 = vsel %vm786_vm11, %v778_v36, %v794_v59 }
 0x25a   :  { %v495_v62 = vmul.f32 1.442695, %v480_v51  ;;  %vm1109_vm9 = vcmp.gt.f32.partialorder %v1101_v52, 0.0  ;;  %v1117_v63 = vmul.f32 0.2, %v1101_v52  ;;  %2953 = vmatprep.subr.bf16.mxu0 %v3475_v30  ;;  %v1102_v4 = vadd.f32 %v3608_v34, %v1071_v57 }
 0x25b   :  { %v810_v25 = vsub.f32 0.0, %v802_v9 }
 0x25c   :  { %3085 = vpow2.f32 %v495_v62  ;;  %v1125_v5 = vsel %vm1109_vm9, %v1101_v52, %v1117_v63  ;;  %v1397_v6 = vpop.permute.xlu1 %1396  ;;  %vm1110_vm15 = vcmp.gt.f32.partialorder %v1102_v4, 0.0  ;;  %v1118_v7 = vmul.f32 0.2, %v1102_v4  ;;  %v3080_v12 = vpop.eup %3079 }
 0x25d   :  { %3087 = vpow2.f32 %v817_v56  ;;  %v1133_v41 = vsub.f32 0.0, %v1125_v5  ;;  %2955 = vmatpush3.bf16.msra.mxu0 %v3475_v30  ;;  %v1075_v8 = vpop.permute.xlu0 %1074  ;;  %v1431_v10 = vadd.f32 %v3636_v60, %v1397_v6  ;;  %v3661_v40 = vsel %vm4455_vm8, %v3080_v12, 0.0 }
 0x25e   :  { %3089 = vpow2.f32 %v815_v58  ;;  %v1103_v11 = vadd.f32 %v3608_v34, %v1075_v8  ;;  %2973 = vmatprep.subr.bf16.mxu0 %v3449_v21  ;;  %v1126_v17 = vsel %vm1110_vm15, %v1102_v4, %v1118_v7  ;;  %v825_v62 = vmul.f32 1.442695, %v810_v25 }
 0x25f   :  { %v1141_v16 = vmul.f32 1.442695, %v1133_v41  ;;  %v1134_v19 = vsub.f32 0.0, %v1126_v17  ;;  %vm1439_vm5 = vcmp.gt.f32.partialorder %v1431_v10, 0.0  ;;  %v1447_v23 = vmul.f32 0.2, %v1431_v10 }
 0x260   :  { %v3082_v18 = vpop.eup %3081  ;;  %vm1111_vm6 = vcmp.gt.f32.partialorder %v1103_v11, 0.0  ;;  %v1119_v28 = vmul.f32 0.2, %v1103_v11 }
 0x261   :  { %3091 = vpow2.f32 %v1141_v16  ;;  %v761_v32 = vpop.permute.xlu1 %760  ;;  %v3654_v49 = vsel %vm4456_vm12, %v3082_v18, 0.0  ;;  %v1143_v33 = vmul.f32 1.442695, %v1134_v19  ;;  %v1455_v35 = vsel %vm1439_vm5, %v1431_v10, %v1447_v23 }
 0x262   :  { %v777_v36 = vadd.f32 %v3525_v50, %v761_v32  ;;  %2735 = vmatprep.mubr.msk.f32.mxu0 %vm188_vm1, %v3654_v49  ;;  %v1405_v39 = vpop.permute.xlu0 %1404  ;;  %3093 = vpow2.f32 %v819_v14  ;;  %v1463_v44 = vsub.f32 0.0, %v1455_v35  ;;  %v1127_v48 = vsel %vm1111_vm6, %v1103_v11, %v1119_v28 }
 0x263   :  { %v3084_v42 = vpop.eup %3083  ;;  %v1433_v51 = vadd.f32 %v3636_v60, %v1405_v39  ;;  %2736 = vmatmul.mubr.msk.f32.gmra.mrb[12].mxu0 %vm188_vm1, %v3661_v40  ;;  %3095 = vpow2.f32 %v1143_v33  ;;  %v1135_v52 = vsub.f32 0.0, %v1127_v48 }
 0x264   :  { %vm785_vm7 = vcmp.gt.f32.partialorder %v777_v36, 0.0  ;;  %v793_v50 = vmul.f32 0.2, %v777_v36  ;;  %v1471_v56 = vmul.f32 1.442695, %v1463_v44  ;;  %v3668_v59 = vsel %vm4454_vm14, %v3084_v42, 0.0 }
 0x265   :  { %vm1441_vm9 = vcmp.gt.f32.partialorder %v1433_v51, 0.0  ;;  %v1449_v58 = vmul.f32 0.2, %v1433_v51  ;;  %3097 = vpow2.f32 %v821_v13  ;;  %v1145_v63 = vmul.f32 1.442695, %v1135_v52  ;;  %2738 = vmatprep.mubr.msk.f32.mxu0 %vm188_vm1, %v3668_v59 }
 0x266   :  { %v3086_v57 = vpop.eup %3085  ;;  %v801_v2 = vsel %vm785_vm7, %v777_v36, %v793_v50  ;;  %v1401_v3 = vpop.permute.xlu1 %1400  ;;  %3099 = vpow2.f32 %v1471_v56 }
 0x267   :  { %v3088_v4 = vpop.eup %3087  ;;  %v809_v5 = vsub.f32 0.0, %v801_v2  ;;  %v1457_v6 = vsel %vm1441_vm9, %v1433_v51, %v1449_v58  ;;  %v1432_v41 = vadd.f32 %v3636_v60, %v1401_v3  ;;  %v1087_v7 = vpop.permute.xlu0 %1086  ;;  %3101 = vpow2.f32 %v1145_v63 }
 0x268   :  { %v3090_v8 = vpop.eup %3089  ;;  %v1465_v9 = vsub.f32 0.0, %v1457_v6  ;;  %v1106_v10 = vadd.f32 %v3608_v34, %v1087_v7  ;;  %v3676_v11 = vsel %vm4453_vm4, %v3086_v57, 0.0  ;;  %3103 = vpow2.f32 %v825_v62 }
 0x269   :  { %v823_v12 = vmul.f32 1.442695, %v809_v5  ;;  %vm1440_vm11 = vcmp.gt.f32.partialorder %v1432_v41, 0.0  ;;  %v1448_v13 = vmul.f32 0.2, %v1432_v41  ;;  %2739 = vmatmul.mubr.msk.f32.gmra.mrb[14].mxu0 %vm188_vm1, %v3676_v11  ;;  %v3704_v57 = vsel %vm48_vm0, %v3088_v4, 0.0 }
 0x26a   :  { %v1475_v14 = vmul.f32 1.442695, %v1465_v9  ;;  %2757 = vmatprep.mubr.msk.f32.mxu0 %vm188_vm1, %v3592_v20  ;;  %v1122_v18 = vmul.f32 0.2, %v1106_v10  ;;  %vm1114_vm15 = vcmp.gt.f32.partialorder %v1106_v10, 0.0  ;;  %v3688_v20 = vsel %vm47_vm2, %v3090_v8, 0.0 }
 0x26b   :  { %v3092_v16 = vpop.eup %3091  ;;  %3105 = vpow2.f32 %v823_v12  ;;  %v1456_v17 = vsel %vm1440_vm11, %v1432_v41, %v1448_v13  ;;  %v1079_v19 = vpop.permute.xlu1 %1078 }
 0x26c   :  { %v1091_v23 = vpop.permute.xlu0 %1090  ;;  %v1464_v25 = vsub.f32 0.0, %v1456_v17  ;;  %v1104_v28 = vadd.f32 %v3608_v34, %v1079_v19  ;;  %v3094_v32 = vpop.eup %3093  ;;  %3107 = vpow2.f32 %v1475_v14  ;;  %v1157_v35 = vsel %vm45_vm13, %v3092_v16, 0.0 }
 0x26d   :  { %v1107_v33 = vadd.f32 %v3608_v34, %v1091_v23  ;;  %2758 = vmatmul.mubr.msk.f32.vlgmr.msra.gmra.mrb[16].mxu0 %vm188_vm1, %v3549_v43  ;;  %v3096_v36 = vpop.eup %3095  ;;  %v1165_v44 = vsel %vm188_vm1, %v1157_v35, 0.0  ;;  %v1130_v48 = vsel %vm1114_vm15, %v1106_v10, %v1122_v18  ;;  %2785 = vmatprep.mubr.msk.f32.mxu1 %vm188_vm1, %v1157_v35  ;;  %v3711_v3 = vsel %vm4456_vm12, %v3094_v32, 0.0 }
 0x26e   :  { %v1473_v39 = vmul.f32 1.442695, %v1464_v25  ;;  %vm1112_vm5 = vcmp.gt.f32.partialorder %v1104_v28, 0.0  ;;  %v1120_v42 = vmul.f32 0.2, %v1104_v28  ;;  %2975 = vmatpush3.bf16.msra.mxu0 %v3449_v21  ;;  %2760 = vmatprep.mubr.msk.f32.mxu0 %vm188_vm1, %v3688_v20  ;;  %v1158_v51 = vsel %vm46_vm10, %v3096_v36, 0.0 }
 0x26f   :  { %vm1115_vm6 = vcmp.gt.f32.partialorder %v1107_v33, 0.0  ;;  %v1123_v43 = vmul.f32 0.2, %v1107_v33  ;;  %2977 = vmatprep.subr.bf16.mxu0 %v3459_v24  ;;  %v3098_v52 = vpop.eup %3097  ;;  %1166 = vadd.xlane.f32.xlu0 %v1165_v44  ;;  %v1168_v58 = vsel %vm188_vm1, %v1158_v51, 0.0  ;;  %v1138_v6 = vsub.f32 0.0, %v1130_v48 }
 0x270   :  { %3109 = vpow2.f32 %v1473_v39  ;;  %v1128_v50 = vsel %vm1112_vm5, %v1104_v28, %v1120_v42  ;;  %2786 = vmatmul.mubr.msk.f32.vlgmr.msra.gmra.mrb[10].mxu1 %vm188_vm1, %v1158_v51  ;;  %v1409_v21 = vpop.permute.xlu1 %1408  ;;  %v1421_v56 = vpop.permute.xlu0 %1420  ;;  %1169 = vadd.xlane.f32.xlu1 %v1168_v58 }
 0x271   :  { %v3100_v62 = vpop.eup %3099  ;;  %v1136_v63 = vsub.f32 0.0, %v1128_v50  ;;  %v1434_v2 = vadd.f32 %v3636_v60, %v1409_v21  ;;  %2761 = vmatmul.mubr.msk.f32.gmra.mrb[18].mxu0 %vm188_vm1, %v3704_v57  ;;  %v1131_v41 = vsel %vm1115_vm6, %v1107_v33, %v1123_v43  ;;  %v1437_v7 = vadd.f32 %v3636_v60, %v1421_v56 }
 0x272   :  { %v3102_v5 = vpop.eup %3101  ;;  %2979 = vmatpush3.bf16.msra.mxu0 %v3459_v24  ;;  %2763 = vmatprep.mubr.msk.f32.mxu0 %vm188_vm1, %v3711_v3  ;;  %v1487_v4 = vsel %vm45_vm13, %v3100_v62, 0.0  ;;  %v3727_v24 = vsel %vm4455_vm8, %v3098_v52, 0.0  ;;  %v1139_v18 = vsub.f32 0.0, %v1131_v41  ;;  %v1151_v28 = vmul.f32 1.442695, %v1138_v6 }
 0x273   :  { %v1147_v8 = vmul.f32 1.442695, %v1136_v63  ;;  %vm1442_vm7 = vcmp.gt.f32.partialorder %v1434_v2, 0.0  ;;  %v1450_v9 = vmul.f32 0.2, %v1434_v2  ;;  %2981 = vmatprep.subr.bf16.mxu0 %v3465_v27  ;;  %v1159_v10 = vsel %vm47_vm2, %v3102_v5, 0.0  ;;  %v3104_v12 = vpop.eup %3103 }
 0x274   :  { %2788 = vmatprep.mubr.msk.f32.mxu1 %vm188_vm1, %v1159_v10  ;;  %v1495_v13 = vsel %vm188_vm1, %v1487_v4, 0.0  ;;  %v1453_v32 = vmul.f32 0.2, %v1437_v7  ;;  %v511_v33 = vsel %vm188_vm1, %v3600_v29, 0.0  ;;  %vm1445_vm11 = vcmp.gt.f32.partialorder %v1437_v7, 0.0 }
 0x275   :  { %v3106_v14 = vpop.eup %3105  ;;  %3111 = vpow2.f32 %v1147_v8  ;;  %v1458_v16 = vsel %vm1442_vm7, %v1434_v2, %v1450_v9  ;;  %1496 = vadd.xlane.f32.xlu0 %v1495_v13  ;;  %2764 = vmatmul.mubr.msk.f32.gmra.mrb[20].mxu0 %vm188_vm1, %v3727_v24  ;;  %v1083_v17 = vpop.permute.xlu1 %1082  ;;  %v1153_v42 = vmul.f32 1.442695, %v1139_v18  ;;  %v841_v21 = vsel %vm188_vm1, %v3688_v20, 0.0 }
 0x276   :  { %v1466_v19 = vsub.f32 0.0, %v1458_v16  ;;  %2983 = vmatpush3.bf16.msra.mxu0 %v3465_v27  ;;  %v1105_v23 = vadd.f32 %v3608_v34, %v1083_v17  ;;  %v3108_v25 = vpop.eup %3107  ;;  %v3738_v35 = vsel %vm4454_vm14, %v3106_v14, 0.0  ;;  %v3744_v27 = vsel %vm4453_vm4, %v3104_v12, 0.0 }
 0x277   :  { %2985 = vmatprep.subr.bf16.mxu0 %v3475_v30  ;;  %2766 = vmatprep.mubr.msk.f32.mxu0 %vm188_vm1, %v3738_v35  ;;  %v1461_v50 = vsel %vm1445_vm11, %v1437_v7, %v1453_v32  ;;  %v1489_v62 = vsel %vm47_vm2, %v3108_v25, 0.0  ;;  %v1171_v7 = vsel %vm188_vm1, %v1159_v10, 0.0  ;;  %v505_v9 = vsel %vm188_vm1, %v3577_v1, 0.0 }
 0x278   :  { %v1477_v36 = vmul.f32 1.442695, %v1466_v19  ;;  %vm1113_vm9 = vcmp.gt.f32.partialorder %v1105_v23, 0.0  ;;  %v1121_v39 = vmul.f32 0.2, %v1105_v23  ;;  %v1469_v5 = vsub.f32 0.0, %v1461_v50 }
 0x279   :  { %512 = vadd.xlane.f32.xlu0 %v511_v33  ;;  %2767 = vmatmul.mubr.msk.f32.gmra.mrb[22].mxu0 %vm188_vm1, %v3744_v27  ;;  %v1501_v19 = vsel %vm188_vm1, %v1489_v62, 0.0 }
 0x27a   :  { %v3110_v29 = vpop.eup %3109  ;;  %3113 = vpow2.f32 %v1477_v36  ;;  %v1129_v44 = vsel %vm1113_vm9, %v1105_v23, %v1121_v39  ;;  %2987 = vmatpush3.bf16.msra.mxu0 %v3475_v30  ;;  %2813 = vmatprep.mubr.msk.f32.mxu0 %vm188_vm1, %v1487_v4  ;;  %v1413_v48 = vpop.permute.xlu1 %1412  ;;  %v1483_v13 = vmul.f32 1.442695, %v1469_v5  ;;  %v514_v23 = vsel %vm188_vm1, %v3596_v22, 0.0 }
 0x27b   :  { %v1137_v43 = vsub.f32 0.0, %v1129_v44  ;;  %v1435_v51 = vadd.f32 %v3636_v60, %v1413_v48  ;;  %v1488_v52 = vsel %vm46_vm10, %v3110_v29, 0.0  ;;  %3004 = vmatprep.subr.bf16.mxu0 %v3339_v15  ;;  %3115 = vpow2.f32 %v1151_v28 }
 0x27c   :  { %v1498_v56 = vsel %vm188_vm1, %v1488_v52, 0.0  ;;  %3117 = vpow2.f32 %v1153_v42  ;;  %v517_v36 = vsel %vm188_vm1, %v3654_v49, 0.0  ;;  %v844_v44 = vsel %vm188_vm1, %v3704_v57, 0.0 }
 0x27d   :  { %v1149_v58 = vmul.f32 1.442695, %v1137_v43  ;;  %vm1443_vm15 = vcmp.gt.f32.partialorder %v1435_v51, 0.0  ;;  %v1451_v30 = vmul.f32 0.2, %v1435_v51  ;;  %842 = vadd.xlane.f32.xlu0 %v841_v21  ;;  %2814 = vmatmul.mubr.msk.f32.vlgmr.msra.gmra.mrb[24].mxu0 %vm188_vm1, %v1488_v52  ;;  %v847_v52 = vsel %vm188_vm1, %v3711_v3, 0.0 }
 0x27e   :  { %1499 = vadd.xlane.f32.xlu1 %v1498_v56  ;;  %2816 = vmatprep.mubr.msk.f32.mxu0 %vm188_vm1, %v1489_v62  ;;  %v1417_v63 = vpop.permute.xlu1 %1416 }
 0x27f   :  { %v3112_v2 = vpop.eup %3111  ;;  %3119 = vpow2.f32 %v1149_v58  ;;  %v1459_v20 = vsel %vm1443_vm15, %v1435_v51, %v1451_v30  ;;  %v1436_v6 = vadd.f32 %v3636_v60, %v1417_v63 }
 0x280   :  { %v1467_v41 = vsub.f32 0.0, %v1459_v20  ;;  %v1160_v4 = vsel %vm48_vm0, %v3112_v2, 0.0 }
 0x281   :  { %vm1444_vm5 = vcmp.gt.f32.partialorder %v1436_v6, 0.0  ;;  %v1452_v8 = vmul.f32 0.2, %v1436_v6  ;;  %1172 = vadd.xlane.f32.xlu0 %v1171_v7  ;;  %2789 = vmatmul.mubr.msk.f32.gmra.mrb[12].mxu1 %vm188_vm1, %v1160_v4  ;;  %v1174_v50 = vsel %vm188_vm1, %v1160_v4, 0.0  ;;  %v523_v4 = vsel %vm188_vm1, %v3668_v59, 0.0 }
 0x282   :  { %v1479_v12 = vmul.f32 1.442695, %v1467_v41  ;;  %506 = vadd.xlane.f32.xlu1 %v505_v9  ;;  %v520_v41 = vsel %vm188_vm1, %v3661_v40, 0.0  ;;  %v850_v9 = vsel %vm188_vm1, %v3727_v24, 0.0 }
 0x283   :  { %v1460_v14 = vsel %vm1444_vm5, %v1436_v6, %v1452_v8  ;;  %v1095_v16 = vpop.permute.xlu1 %1094 }
 0x284   :  { %v3114_v17 = vpop.eup %3113  ;;  %3121 = vpow2.f32 %v1479_v12  ;;  %v1468_v18 = vsub.f32 0.0, %v1460_v14  ;;  %v1108_v10 = vadd.f32 %v3608_v34, %v1095_v16  ;;  %v526_v16 = vsel %vm188_vm1, %v3676_v11, 0.0 }
 0x285   :  { %1502 = vadd.xlane.f32.xlu0 %v1501_v19  ;;  %v1490_v25 = vsel %vm48_vm0, %v3114_v17, 0.0  ;;  %v3116_v1 = vpop.eup %3115  ;;  %3123 = vpow2.f32 %v1483_v13  ;;  %v853_v13 = vsel %vm188_vm1, %v3738_v35, 0.0  ;;  %v856_v17 = vsel %vm188_vm1, %v3744_v27, 0.0  ;;  %v1726_v19 = vld [vmem:[%s4449_s5 + $0x8] sm:$0xff]  ;;  %v1727_v27 = vld [vmem:[%s4449_s5 + $0x10] sm:$0xff] }
 0x286   :  { %v1481_v28 = vmul.f32 1.442695, %v1468_v18  ;;  %vm1116_vm6 = vcmp.gt.f32.partialorder %v1108_v10, 0.0  ;;  %v1124_v32 = vmul.f32 0.2, %v1108_v10  ;;  %515 = vadd.xlane.f32.xlu1 %v514_v23  ;;  %2817 = vmatmul.mubr.msk.f32.gmra.mrb[26].mxu0 %vm188_vm1, %v1490_v25  ;;  %v3118_v33 = vpop.eup %3117  ;;  %v1162_v49 = vsel %vm4455_vm8, %v3116_v1, 0.0 }
 0x287   :  { %v1504_v63 = vsel %vm188_vm1, %v1490_v25, 0.0  ;;  %v1180_v40 = vsel %vm188_vm1, %v1162_v49, 0.0  ;;  %v1728_v23 = vld [vmem:[%s4449_s5 + $0x18] sm:$0xff]  ;;  %v1729_v1 = vld [vmem:[%s4449_s5 + $0x20] sm:$0xff] }
 0x288   :  { %3125 = vpow2.f32 %v1481_v28  ;;  %v1132_v34 = vsel %vm1116_vm6, %v1108_v10, %v1124_v32  ;;  %v1425_v39 = vpop.permute.xlu1 %1424  ;;  %v1725_v10 = vld [vmem:[%s4449_s5] sm:$0xff]  ;;  %v2992_v25 = vpack.c.bf16 %v1728_v23, %v1727_v27  ;;  %v1730_v28 = vld [vmem:[%s4449_s5 + $0x28] sm:$0xff] }
 0x289   :  { %v3120_v29 = vpop.eup %3119  ;;  %v1140_v22 = vsub.f32 0.0, %v1132_v34  ;;  %518 = vadd.xlane.f32.xlu0 %v517_v36  ;;  %v1438_v42 = vadd.f32 %v3636_v60, %v1425_v39  ;;  %v1163_v60 = vsel %vm4454_vm14, %v3118_v33, 0.0  ;;  %v2988_v11 = vpack.c.bf16 %v1726_v19, %v1725_v10  ;;  %v1731_v33 = vld [vmem:[%s4449_s5 + $0x30] sm:$0xff]  ;;  %v1732_v34 = vld [vmem:[%s4449_s5 + $0x38] sm:$0xff] }
 0x28a   :  { %845 = vadd.xlane.f32.xlu1 %v844_v44  ;;  %v1161_v48 = vsel %vm4456_vm12, %v3120_v29, 0.0  ;;  %v1183_v14 = vsel %vm188_vm1, %v1163_v60, 0.0  ;;  %v2996_v32 = vpack.c.bf16 %v1730_v28, %v1729_v1  ;;  %v3000_v36 = vpack.c.bf16 %v1732_v34, %v1731_v33 }
 0x28b   :  { %v1155_v43 = vmul.f32 1.442695, %v1140_v22  ;;  %vm1446_vm7 = vcmp.gt.f32.partialorder %v1438_v42, 0.0  ;;  %v1454_v51 = vmul.f32 0.2, %v1438_v42  ;;  %2791 = vmatprep.mubr.msk.f32.mxu1 %vm188_vm1, %v1161_v48  ;;  %v1177_v3 = vsel %vm188_vm1, %v1161_v48, 0.0  ;;  %2989 = vmatprep.subr.bf16.mxu1 %v2988_v11 }
 0x28c   :  { %2792 = vmatmul.mubr.msk.f32.gmra.mrb[14].mxu1 %vm188_vm1, %v1162_v49 }
 0x28d   :  { %3127 = vpow2.f32 %v1155_v43  ;;  %v1462_v57 = vsel %vm1446_vm7, %v1438_v42, %v1454_v51  ;;  %848 = vadd.xlane.f32.xlu0 %v847_v52  ;;  %2794 = vmatprep.mubr.msk.f32.mxu1 %vm188_vm1, %v1163_v60 }
 0x28e   :  { %v3122_v21 = vpop.eup %3121  ;;  %v1470_v56 = vsub.f32 0.0, %v1462_v57  ;;  %1175 = vadd.xlane.f32.xlu1 %v1174_v50  ;;  %2991 = vmatpush3.bf16.msra.mxu1 %v2988_v11 }
 0x28f   :  { %v1491_v58 = vsel %vm4456_vm12, %v3122_v21, 0.0  ;;  %v3124_v62 = vpop.eup %3123  ;;  %2993 = vmatprep.subr.bf16.mxu1 %v2992_v25 }
 0x290   :  { %v1485_v30 = vmul.f32 1.442695, %v1470_v56  ;;  %2819 = vmatprep.mubr.msk.f32.mxu0 %vm188_vm1, %v1491_v58  ;;  %v1507_v20 = vsel %vm188_vm1, %v1491_v58, 0.0  ;;  %v1493_v6 = vsel %vm4454_vm14, %v3124_v62, 0.0 }
 0x291   :  { %1178 = vadd.xlane.f32.xlu0 %v1177_v3  ;;  %v1513_v35 = vsel %vm188_vm1, %v1493_v6, 0.0 }
 0x292   :  { %v3126_v2 = vpop.eup %3125  ;;  %3129 = vpow2.f32 %v1485_v30  ;;  %1505 = vadd.xlane.f32.xlu1 %v1504_v63  ;;  %2995 = vmatpush3.bf16.msra.mxu1 %v2992_v25 }
 0x293   :  { %v1492_v5 = vsel %vm4455_vm8, %v3126_v2, 0.0  ;;  %2997 = vmatprep.subr.bf16.mxu1 %v2996_v32 }
 0x294   :  { %2820 = vmatmul.mubr.msk.f32.gmra.mrb[28].mxu0 %vm188_vm1, %v1492_v5  ;;  %v1510_v24 = vsel %vm188_vm1, %v1492_v5, 0.0 }
 0x295   :  { %1508 = vadd.xlane.f32.xlu0 %v1507_v20  ;;  %2822 = vmatprep.mubr.msk.f32.mxu0 %vm188_vm1, %v1493_v6 }
 0x296   :  { %521 = vadd.xlane.f32.xlu1 %v520_v41  ;;  %2999 = vmatpush3.bf16.msra.mxu1 %v2996_v32 }
 0x297   :  { %v3128_v7 = vpop.eup %3127  ;;  %3001 = vmatprep.subr.bf16.mxu1 %v3000_v36 }
 0x298   :  { %v1164_v8 = vsel %vm4453_vm4, %v3128_v7, 0.0 }
 0x299   :  { %524 = vadd.xlane.f32.xlu0 %v523_v4  ;;  %2795 = vmatmul.mubr.msk.f32.gmra.mrb[16].mxu1 %vm188_vm1, %v1164_v8  ;;  %v1186_v18 = vsel %vm188_vm1, %v1164_v8, 0.0 }
 0x29a   :  { %851 = vadd.xlane.f32.xlu1 %v850_v9  ;;  %3003 = vmatpush3.bf16.msra.mxu1 %v3000_v36  ;;  %v3891_v36 = vand.u32 127, %v395_v45 }
 0x29c   :  { %v3130_v12 = vpop.eup %3129  ;;  %vm1052_vm7 = vcmp.ge.s32.totalorder %v3891_v36, 16 }
 0x29d   :  { %854 = vadd.xlane.f32.xlu0 %v853_v13  ;;  %v1494_v59 = vsel %vm4453_vm4, %v3130_v12, 0.0 }
 0x29e   :  { %1181 = vadd.xlane.f32.xlu1 %v1180_v40  ;;  %2823 = vmatmul.mubr.msk.f32.gmra.mrb[30].mxu0 %vm188_vm1, %v1494_v59 }
 0x29f   :  { %2869 = vmatprep.mubr.msk.f32.mxu0 %vm3342_vm3, %v3343_v31  ;;  %v1516_v31 = vsel %vm188_vm1, %v1494_v59, 0.0  ;;  %vm723_vm3 = vcmp.lt.s32.totalorder %v3891_v36, 16 }
 0x2a1   :  { %1184 = vadd.xlane.f32.xlu0 %v1183_v14 }
 0x2a2   :  { %1511 = vadd.xlane.f32.xlu1 %v1510_v24 }
 0x2a5   :  { %1514 = vadd.xlane.f32.xlu0 %v1513_v35 }
 0x2a6   :  { %527 = vadd.xlane.f32.xlu1 %v526_v16 }
 0x2aa   :  { %857 = vadd.xlane.f32.xlu1 %v856_v17 }
 0x2ae   :  { %1187 = vadd.xlane.f32.xlu1 %v1186_v18 }
 0x2b2   :  { %1517 = vadd.xlane.f32.xlu1 %v1516_v31 }
 0x2d9   :  { %v840_v44 = vpop.xlane.xlu1 %839 }
 0x2da   :  { %v510_v39 = vpop.xlane.xlu0 %509  ;;  %v860_v12 = vmax.f32 %v840_v44, 1e-30 }
 0x2db   :  { %v530_v21 = vmax.f32 %v510_v39, 1e-30 }
 0x2dd   :  { %3131 = vrcp.f32 %v530_v21 }
 0x2e3   :  { %v837_v29 = vpop.xlane.xlu0 %836 }
 0x2e4   :  { %v859_v14 = vmax.f32 %v837_v29, 1e-30 }
 0x2e7   :  { %v3132_v6 = vpop.eup %3131 }
 0x2fc   :  { %v3854_v22 = vpop.xlane.xlu0 %1166 }
 0x2fd   :  { %v1170_v43 = vpop.xlane.xlu1 %1169  ;;  %v1189_v25 = vmax.f32 %v3854_v22, 1e-30 }
 0x2fe   :  { %v1190_v32 = vmax.f32 %v1170_v43, 1e-30 }
 0x302   :  { %v3856_v42 = vpop.xlane.xlu0 %1496 }
 0x303   :  { %v1519_v34 = vmax.f32 %v3856_v42, 1e-30 }
 0x306   :  { %v513_v48 = vpop.xlane.xlu0 %512 }
 0x307   :  { %v531_v2 = vmax.f32 %v513_v48, 1e-30 }
 0x30a   :  { %v3858_v51 = vpop.xlane.xlu0 %842 }
 0x30b   :  { %v3860_v49 = vpop.xlane.xlu1 %1499  ;;  %v861_v22 = vmax.f32 %v3858_v51, 1e-30 }
 0x30c   :  { %v1520_v44 = vmax.f32 %v3860_v49, 1e-30 }
 0x30e   :  { %v3862_v52 = vpop.xlane.xlu0 %1172 }
 0x30f   :  { %v507_v60 = vpop.xlane.xlu1 %506  ;;  %v1191_v42 = vmax.f32 %v3862_v52, 1e-30 }
 0x310   :  { %v529_v56 = vmax.f32 %v507_v60, 1e-30 }
 0x312   :  { %v3864_v57 = vpop.xlane.xlu0 %1502  ;;  %3133 = vrcp.f32 %v529_v56 }
 0x313   :  { %v516_v50 = vpop.xlane.xlu1 %515  ;;  %v1521_v21 = vmax.f32 %v3864_v57, 1e-30 }
 0x314   :  { %v532_v62 = vmax.f32 %v516_v50, 1e-30 }
 0x316   :  { %v519_v58 = vpop.xlane.xlu0 %518  ;;  %3135 = vrcp.f32 %v532_v62 }
 0x317   :  { %v3866_v30 = vpop.xlane.xlu1 %845  ;;  %3137 = vrcp.f32 %v531_v2  ;;  %v533_v18 = vmax.f32 %v519_v58, 1e-30 }
 0x318   :  { %v862_v49 = vmax.f32 %v3866_v30, 1e-30 }
 0x31a   :  { %v3868_v3 = vpop.xlane.xlu0 %848 }
 0x31b   :  { %v3870_v63 = vpop.xlane.xlu1 %1175 }
 0x31c   :  { %v3134_v4 = vpop.eup %3133 }
 0x31e   :  { %v3874_v20 = vpop.xlane.xlu0 %1178 }
 0x31f   :  { %v3872_v5 = vpop.xlane.xlu1 %1505 }
 0x320   :  { %v3136_v17 = vpop.eup %3135 }
 0x321   :  { %v3138_v10 = vpop.eup %3137 }
 0x322   :  { %v3876_v40 = vpop.xlane.xlu0 %1508 }
 0x323   :  { %v522_v41 = vpop.xlane.xlu1 %521  ;;  %v2731_v7 = vpop.f32.mrb[8].mxu0 }
 0x324   :  { %v675_v8 = vmul.f32 %v3132_v6, %v2731_v7  ;;  %v635_v9 = vpop.f32.mrb[9].mxu0  ;;  %v534_v16 = vmax.f32 %v522_v41, 1e-30 }
 0x325   :  { %v674_v13 = vmul.f32 %v3134_v4, %v635_v9 }
 0x326   :  { %v692_v59 = vmul.f32 1.442695, %v675_v8  ;;  %v525_v1 = vpop.xlane.xlu0 %524  ;;  %vm683_vm9 = vcmp.gt.f32.partialorder %v675_v8, 0.0 }
 0x327   :  { %v690_v24 = vmul.f32 1.442695, %v674_v13  ;;  %v3878_v35 = vpop.xlane.xlu1 %851  ;;  %v535_v39 = vmax.f32 %v525_v1, 1e-30  ;;  %vm682_vm11 = vcmp.gt.f32.partialorder %v674_v13, 0.0 }
 0x328   :  { %3139 = vpow2.f32 %v692_v59  ;;  %v863_v59 = vmax.f32 %v3868_v3, 1e-30  ;;  %v1193_v1 = vmax.f32 %v3874_v20, 1e-30 }
 0x329   :  { %3141 = vrcp.f32 %v860_v12  ;;  %v2734_v31 = vpop.f32.mrb[10].mxu0 }
 0x32a   :  { %3143 = vpow2.f32 %v690_v24  ;;  %v3880_v19 = vmul.f32 %v3136_v17, %v2734_v31  ;;  %v645_v11 = vpop.f32.mrb[11].mxu0  ;;  %v855_v17 = vpop.xlane.xlu0 %854 }
 0x32b   :  { %3145 = vrcp.f32 %v859_v14  ;;  %v3882_v27 = vmul.f32 %v3138_v10, %v645_v11  ;;  %v3884_v23 = vpop.xlane.xlu1 %1181  ;;  %v1192_v11 = vmax.f32 %v3870_v63, 1e-30  ;;  %v865_v63 = vmax.f32 %v855_v17, 1e-30 }
 0x32c   :  { %3147 = vrcp.f32 %v534_v16  ;;  %v696_v28 = vmul.f32 1.442695, %v3880_v19  ;;  %vm685_vm15 = vcmp.gt.f32.partialorder %v3880_v19, 0.0 }
 0x32d   :  { %3149 = vrcp.f32 %v533_v18  ;;  %v694_v33 = vmul.f32 1.442695, %v3882_v27  ;;  %vm684_vm5 = vcmp.gt.f32.partialorder %v3882_v27, 0.0 }
 0x32e   :  { %3151 = vpow2.f32 %v696_v28 }
 0x32f   :  { %3153 = vpow2.f32 %v694_v33  ;;  %v3893_v29 = vpop.xlane.xlu1 %1511 }
 0x330   :  { %3155 = vrcp.f32 %v1189_v25 }
 0x331   :  { %3157 = vrcp.f32 %v1190_v32 }
 0x332   :  { %v3140_v48 = vpop.eup %3139  ;;  %3159 = vrcp.f32 %v1519_v34 }
 0x333   :  { %v3897_v43 = vpop.eup %3141  ;;  %v2436_v60 = vadd.f32 -1.0, %v3140_v48  ;;  %3161 = vrcp.f32 %v535_v39  ;;  %v528_v45 = vpop.xlane.xlu1 %527 }
 0x334   :  { %v3144_v50 = vpop.eup %3143  ;;  %3163 = vrcp.f32 %v861_v22  ;;  %v536_v51 = vmax.f32 %v528_v45, 1e-30 }
 0x335   :  { %v3902_v56 = vpop.eup %3145  ;;  %3165 = vrcp.f32 %v1520_v44  ;;  %v715_v58 = vsel %vm683_vm9, %v675_v8, %v2436_v60  ;;  %v2435_v62 = vadd.f32 -1.0, %v3144_v50  ;;  %vm1053_vm9 = vcmp.lt.s32.totalorder %v3891_v36, 32 }
 0x336   :  { %v3148_v2 = vpop.eup %3147  ;;  %v3907_v52 = vsel %vm723_vm3, %v715_v58, 0.0  ;;  %3167 = vrcp.f32 %v536_v51  ;;  %v2737_v6 = vpop.f32.mrb[12].mxu0 }
 0x337   :  { %v3150_v41 = vpop.eup %3149  ;;  %3169 = vrcp.f32 %v1191_v42  ;;  %v714_v57 = vsel %vm682_vm11, %v674_v13, %v2435_v62  ;;  %v3909_v7 = vmul.f32 %v3148_v2, %v2737_v6  ;;  %v655_v4 = vpop.f32.mrb[13].mxu0  ;;  %v864_v13 = vmax.f32 %v3878_v35, 1e-30 }
 0x338   :  { %v3152_v9 = vpop.eup %3151  ;;  %3171 = vrcp.f32 %v1521_v21  ;;  %v3913_v30 = vsel %vm723_vm3, %v714_v57, 0.0  ;;  %v3915_v8 = vmul.f32 %v3150_v41, %v655_v4  ;;  %v858_v32 = vpop.xlane.xlu1 %857  ;;  %v1522_v42 = vmax.f32 %v3872_v5, 1e-30 }
 0x339   :  { %v3154_v12 = vpop.eup %3153  ;;  %3173 = vrcp.f32 %v862_v49  ;;  %v2438_v14 = vadd.f32 -1.0, %v3152_v9  ;;  %v700_v24 = vmul.f32 1.442695, %v3909_v7  ;;  %v866_v48 = vmax.f32 %v858_v32, 1e-30 }
 0x33a   :  { %v3919_v16 = vpop.eup %3155  ;;  %v2437_v18 = vadd.f32 -1.0, %v3154_v12  ;;  %v698_v31 = vmul.f32 1.442695, %v3915_v8  ;;  %v1523_v12 = vmax.f32 %v3876_v40, 1e-30  ;;  %vm687_vm6 = vcmp.gt.f32.partialorder %v3909_v7, 0.0 }
 0x33b   :  { %v3158_v10 = vpop.eup %3157  ;;  %v717_v25 = vsel %vm685_vm15, %v3880_v19, %v2438_v14  ;;  %3175 = vpow2.f32 %v700_v24  ;;  %vm686_vm11 = vcmp.gt.f32.partialorder %v3915_v8, 0.0  ;;  %vm1382_vm15 = vcmp.ge.s32.totalorder %v3891_v36, 32 }
 0x33c   :  { %v3927_v3 = vpop.eup %3159  ;;  %v3932_v35 = vsel %vm723_vm3, %v717_v25, 0.0  ;;  %v716_v28 = vsel %vm684_vm5, %v3882_v27, %v2437_v18  ;;  %3177 = vpow2.f32 %v698_v31  ;;  %v2740_v33 = vpop.f32.mrb[14].mxu0  ;;  %vm1383_vm5 = vcmp.lt.s32.totalorder %v3891_v36, 48 }
 0x33d   :  { %v3162_v34 = vpop.eup %3161  ;;  %3179 = vrcp.f32 %v863_v59  ;;  %v3937_v19 = vsel %vm723_vm3, %v716_v28, 0.0  ;;  %v665_v39 = vpop.f32.mrb[15].mxu0  ;;  %v1194_v59 = vmax.f32 %v3884_v23, 1e-30 }
 0x33e   :  { %v3164_v22 = vpop.eup %3163  ;;  %3181 = vrcp.f32 %v864_v13  ;;  %v3939_v20 = vmul.f32 %v3162_v34, %v665_v39 }
 0x33f   :  { %v3941_v44 = vpop.eup %3165  ;;  %3183 = vrcp.f32 %v1192_v11 }
 0x340   :  { %v3168_v27 = vpop.eup %3167  ;;  %3185 = vrcp.f32 %v1193_v1  ;;  %v702_v60 = vmul.f32 1.442695, %v3939_v20  ;;  %v2759_v45 = vpop.f32.mrb[16].mxu0 }
 0x341   :  { %v3945_v50 = vpop.eup %3169  ;;  %3187 = vrcp.f32 %v865_v63  ;;  %v3947_v21 = vmul.f32 %v3168_v27, %v2740_v33  ;;  %v3950_v51 = vmul.f32 %v3897_v43, %v2759_v45  ;;  %v965_v49 = vpop.f32.mrb[17].mxu0 }
 0x342   :  { %v3952_v58 = vpop.eup %3171  ;;  %3189 = vpow2.f32 %v702_v60  ;;  %v3955_v62 = vmul.f32 %v3902_v56, %v965_v49  ;;  %v3980_v33 = vpop.xlane.xlu0 %1184 }
 0x343   :  { %v3174_v2 = vpop.eup %3173  ;;  %3191 = vrcp.f32 %v866_v48  ;;  %v704_v5 = vmul.f32 1.442695, %v3947_v21  ;;  %v2787_v6 = vpop.f32.mrb[10].mxu1  ;;  %v1022_v41 = vmul.f32 1.442695, %v3950_v51  ;;  %vm1013_vm4 = vcmp.gt.f32.partialorder %v3950_v51, 0.0 }
 0x344   :  { %3193 = vrcp.f32 %v1522_v42  ;;  %v1020_v57 = vmul.f32 1.442695, %v3955_v62  ;;  %v3960_v4 = vmul.f32 %v3158_v10, %v2787_v6  ;;  %v2762_v43 = vpop.f32.mrb[18].mxu0  ;;  %v1295_v14 = vpop.f32.mrb[11].mxu1  ;;  %v1195_v49 = vmax.f32 %v3980_v33, 1e-30 }
 0x345   :  { %v3176_v9 = vpop.eup %3175  ;;  %3195 = vpow2.f32 %v704_v5  ;;  %v3964_v56 = vmul.f32 %v3174_v2, %v2762_v43  ;;  %v975_v24 = vpop.f32.mrb[19].mxu0  ;;  %v3974_v25 = vmul.f32 %v3919_v16, %v1295_v14  ;;  %v1524_v2 = vmax.f32 %v3893_v29, 1e-30 }
 0x346   :  { %v3178_v13 = vpop.eup %3177  ;;  %v2440_v17 = vadd.f32 -1.0, %v3176_v9  ;;  %3197 = vpow2.f32 %v1022_v41  ;;  %v1352_v18 = vmul.f32 1.442695, %v3960_v4  ;;  %v3976_v1 = vmul.f32 %v3164_v22, %v975_v24 }
 0x347   :  { %v3180_v31 = vpop.eup %3179  ;;  %v2439_v40 = vadd.f32 -1.0, %v3178_v13  ;;  %3199 = vpow2.f32 %v1020_v57  ;;  %v1026_v23 = vmul.f32 1.442695, %v3964_v56  ;;  %v1350_v22 = vmul.f32 1.442695, %v3974_v25 }
 0x348   :  { %v3182_v10 = vpop.eup %3181  ;;  %v719_v11 = vsel %vm687_vm6, %v3909_v7, %v2440_v17  ;;  %3201 = vpow2.f32 %v1352_v18  ;;  %v2765_v28 = vpop.f32.mrb[20].mxu0  ;;  %v1024_v42 = vmul.f32 1.442695, %v3976_v1  ;;  %vm688_vm6 = vcmp.gt.f32.partialorder %v3939_v20, 0.0 }
 0x349   :  { %v3978_v32 = vpop.eup %3183  ;;  %v3984_v34 = vsel %vm723_vm3, %v719_v11, 0.0  ;;  %v718_v63 = vsel %vm686_vm11, %v3915_v8, %v2439_v40  ;;  %3203 = vpow2.f32 %v1026_v23  ;;  %v3987_v39 = vmul.f32 %v3182_v10, %v2765_v28  ;;  %v985_v7 = vpop.f32.mrb[21].mxu0 }
 0x34a   :  { %v3989_v48 = vpop.eup %3185  ;;  %3205 = vrcp.f32 %v1523_v12  ;;  %v3993_v16 = vsel %vm723_vm3, %v718_v63, 0.0  ;;  %v3999_v60 = vmul.f32 %v3180_v31, %v985_v7  ;;  %vm689_vm11 = vcmp.gt.f32.partialorder %v3947_v21, 0.0 }
 0x34b   :  { %v3188_v27 = vpop.eup %3187  ;;  %3207 = vrcp.f32 %v1194_v59  ;;  %v1030_v8 = vmul.f32 1.442695, %v3987_v39  ;;  %vm1012_vm14 = vcmp.gt.f32.partialorder %v3955_v62, 0.0  ;;  %vm1343_vm8 = vcmp.gt.f32.partialorder %v3960_v4, 0.0 }
 0x34c   :  { %v3190_v45 = vpop.eup %3189  ;;  %3209 = vpow2.f32 %v1350_v22  ;;  %v2768_v5 = vpop.f32.mrb[22].mxu0  ;;  %v1028_v57 = vmul.f32 1.442695, %v3999_v60  ;;  %vm1015_vm12 = vcmp.gt.f32.partialorder %v3964_v56, 0.0 }
 0x34d   :  { %v3192_v6 = vpop.eup %3191  ;;  %v2441_v41 = vadd.f32 -1.0, %v3190_v45  ;;  %3211 = vpow2.f32 %v1024_v42  ;;  %v995_v43 = vpop.f32.mrb[23].mxu0 }
 0x34e   :  { %v4006_v9 = vpop.eup %3193  ;;  %3213 = vpow2.f32 %v1030_v8  ;;  %v4009_v12 = vmul.f32 %v3192_v6, %v2768_v5  ;;  %v4011_v59 = vmul.f32 %v3188_v27, %v995_v43 }
 0x34f   :  { %v3196_v14 = vpop.eup %3195  ;;  %v720_v24 = vsel %vm688_vm6, %v3939_v20, %v2441_v41  ;;  %3215 = vpow2.f32 %v1028_v57  ;;  %vm4026_vm6 = vmand %vm1052_vm7, %vm1053_vm9 }
 0x350   :  { %v3198_v13 = vpop.eup %3197  ;;  %v2442_v17 = vadd.f32 -1.0, %v3196_v14  ;;  %v4018_v18 = vsel %vm723_vm3, %v720_v24, 0.0  ;;  %v1034_v31 = vmul.f32 1.442695, %v4009_v12  ;;  %v2815_v40 = vpop.f32.mrb[24].mxu0  ;;  %vm4052_vm7 = vmand %vm1382_vm15, %vm1383_vm5  ;;  %vm1019_vm9 = vcmp.gt.f32.partialorder %v4009_v12, 0.0 }
 0x351   :  { %v3200_v23 = vpop.eup %3199  ;;  %v2452_v10 = vadd.f32 -1.0, %v3198_v13  ;;  %v1032_v11 = vmul.f32 1.442695, %v4011_v59  ;;  %v4033_v28 = vmul.f32 %v3941_v44, %v2815_v40  ;;  %v1625_v63 = vpop.f32.mrb[25].mxu0  ;;  %vm1018_vm15 = vcmp.gt.f32.partialorder %v4011_v59, 0.0 }
 0x352   :  { %v3202_v7 = vpop.eup %3201  ;;  %v721_v22 = vsel %vm689_vm11, %v3947_v21, %v2442_v17  ;;  %v2451_v27 = vadd.f32 -1.0, %v3200_v23  ;;  %3217 = vpow2.f32 %v1034_v31  ;;  %v4039_v42 = vmul.f32 %v3927_v3, %v1625_v63 }
 0x353   :  { %v3204_v8 = vpop.eup %3203  ;;  %v4043_v45 = vsel %vm723_vm3, %v721_v22, 0.0  ;;  %v1045_v44 = vsel %vm1013_vm4, %v3950_v51, %v2452_v10  ;;  %v2468_v5 = vadd.f32 -1.0, %v3202_v7  ;;  %3219 = vpow2.f32 %v1032_v11 }
 0x354   :  { %v4056_v3 = vpop.eup %3205  ;;  %v1058_v6 = vsel %vm4026_vm6, %v1045_v44, %v3907_v52  ;;  %v1044_v51 = vsel %vm1012_vm14, %v3955_v62, %v2451_v27  ;;  %v2454_v41 = vadd.f32 -1.0, %v3204_v8  ;;  %vm1342_vm4 = vcmp.gt.f32.partialorder %v3974_v25, 0.0  ;;  %v2790_v57 = vpop.f32.mrb[12].mxu1 }
 0x355   :  { %v3208_v43 = vpop.eup %3207  ;;  %v1057_v14 = vsel %vm4026_vm6, %v1044_v51, %v3913_v30  ;;  %v1375_v24 = vsel %vm1343_vm8, %v3960_v4, %v2468_v5  ;;  %vm1014_vm3 = vcmp.gt.f32.partialorder %v3976_v1, 0.0  ;;  %v1682_v52 = vmul.f32 1.442695, %v4033_v28  ;;  %v1305_v13 = vpop.f32.mrb[13].mxu1 }
 0x356   :  { %v3210_v17 = vpop.eup %3209  ;;  %v4075_v62 = vsel %vm4052_vm7, %v1375_v24, %v1058_v6  ;;  %v4080_v31 = vsel %vm1015_vm12, %v3964_v56, %v2454_v41  ;;  %v1680_v30 = vmul.f32 1.442695, %v4039_v42  ;;  %v4084_v40 = vmul.f32 %v3978_v32, %v2790_v57 }
 0x357   :  { %v3212_v4 = vpop.eup %3211  ;;  %v1060_v23 = vsel %vm4026_vm6, %v4080_v31, %v3932_v35  ;;  %v2467_v10 = vadd.f32 -1.0, %v3210_v17  ;;  %3221 = vpow2.f32 %v1682_v52  ;;  %vm1712_vm8 = vcmp.ge.s32.totalorder %v3891_v36, 48 }
 0x358   :  { %v4092_v11 = vmul.f32 %v3945_v50, %v1305_v13  ;;  %v3214_v56 = vpop.eup %3213  ;;  %v2453_v63 = vadd.f32 -1.0, %v3212_v4  ;;  %vm1017_vm12 = vcmp.gt.f32.partialorder %v3987_v39, 0.0  ;;  %3223 = vpow2.f32 %v1680_v30  ;;  %v1188_v50 = vpop.xlane.xlu1 %1187 }
 0x359   :  { %v1356_v32 = vmul.f32 1.442695, %v4084_v40  ;;  %v3216_v7 = vpop.eup %3215  ;;  %v1374_v22 = vsel %vm1342_vm4, %v3974_v25, %v2467_v10  ;;  %v2456_v27 = vadd.f32 -1.0, %v3214_v56  ;;  %vm1016_vm14 = vcmp.gt.f32.partialorder %v3999_v60, 0.0  ;;  %v2818_v44 = vpop.f32.mrb[26].mxu0 }
 0x35a   :  { %v1354_v8 = vmul.f32 1.442695, %v4092_v11  ;;  %v4104_v5 = vsel %vm1014_vm3, %v3976_v1, %v2453_v63  ;;  %v2455_v6 = vadd.f32 -1.0, %v3216_v7  ;;  %v4107_v51 = vmul.f32 %v4006_v9, %v2818_v44  ;;  %v1635_v41 = vpop.f32.mrb[27].mxu0 }
 0x35b   :  { %3225 = vpow2.f32 %v1356_v32  ;;  %v1059_v25 = vsel %vm4026_vm6, %v4104_v5, %v3937_v19  ;;  %v4116_v57 = vsel %vm1017_vm12, %v3987_v39, %v2456_v27  ;;  %v4119_v1 = vmul.f32 %v3952_v58, %v1635_v41 }
 0x35c   :  { %3227 = vpow2.f32 %v1354_v8  ;;  %v3218_v24 = vpop.eup %3217  ;;  %v1062_v9 = vsel %vm4026_vm6, %v4116_v57, %v3984_v34  ;;  %v4130_v52 = vsel %vm1016_vm14, %v3999_v60, %v2455_v6  ;;  %v1686_v39 = vmul.f32 1.442695, %v4107_v51  ;;  %v1518_v56 = vpop.xlane.xlu1 %1517 }
 0x35d   :  { %3229 = vrcp.f32 %v1524_v2  ;;  %v3220_v13 = vpop.eup %3219  ;;  %v1196_v17 = vmax.f32 %v1188_v50, 1e-30  ;;  %v1061_v29 = vsel %vm4026_vm6, %v4130_v52, %v3993_v16  ;;  %v2458_v58 = vadd.f32 -1.0, %v3218_v24 }
 0x35e   :  { %v1684_v2 = vmul.f32 1.442695, %v4119_v1  ;;  %v2457_v30 = vadd.f32 -1.0, %v3220_v13  ;;  %3231 = vpow2.f32 %v1686_v39  ;;  %v1387_v60 = vsel %vm4052_vm7, %v1374_v22, %v1057_v14  ;;  %v1515_v22 = vpop.xlane.xlu0 %1514 }
 0x35f   :  { %v4142_v4 = vsel %vm1019_vm9, %v4009_v12, %v2458_v58  ;;  %vm1713_vm5 = vcmp.lt.s32.totalorder %v3891_v36, 64  ;;  %v2793_v10 = vpop.f32.mrb[14].mxu1  ;;  %vm1673_vm4 = vcmp.gt.f32.partialorder %v4033_v28, 0.0  ;;  %v1525_v41 = vmax.f32 %v1515_v22, 1e-30 }
 0x360   :  { %3233 = vpow2.f32 %v1684_v2  ;;  %v1064_v63 = vsel %vm4026_vm6, %v4142_v4, %v4043_v45  ;;  %v4151_v32 = vsel %vm1018_vm15, %v4011_v59, %v2457_v30  ;;  %v4153_v7 = vmul.f32 %v3208_v43, %v2793_v10  ;;  %v1315_v14 = vpop.f32.mrb[15].mxu1  ;;  %vm4168_vm11 = vmand %vm1712_vm8, %vm1713_vm5 }
 0x361   :  { %v3222_v12 = vpop.eup %3221  ;;  %3235 = vrcp.f32 %v1195_v49  ;;  %v1063_v27 = vsel %vm4026_vm6, %v4151_v32, %v4018_v18  ;;  %v4162_v8 = vmul.f32 %v3989_v48, %v1315_v14  ;;  %v1526_v49 = vmax.f32 %v1518_v56, 1e-30  ;;  %v2499_v18 = vld [vmem:[%s4450_s6] ss:$0 sm:$0xff] }
 0x362   :  { %v3224_v44 = vpop.eup %3223  ;;  %3237 = vrcp.f32 %v1196_v17  ;;  %v2484_v59 = vadd.f32 -1.0, %v3222_v12  ;;  %v1360_v33 = vmul.f32 1.442695, %v4153_v7  ;;  %vm1672_vm3 = vcmp.gt.f32.partialorder %v4039_v42, 0.0 }
 0x363   :  { %v2483_v50 = vadd.f32 -1.0, %v3224_v44  ;;  %v1358_v48 = vmul.f32 1.442695, %v4162_v8  ;;  %vm1345_vm8 = vcmp.gt.f32.partialorder %v4084_v40, 0.0  ;;  %vm1344_vm12 = vcmp.gt.f32.partialorder %v4092_v11, 0.0 }
 0x364   :  { %v1705_v24 = vsel %vm1673_vm4, %v4033_v28, %v2484_v59  ;;  %3239 = vpow2.f32 %v1360_v33  ;;  %vm1675_vm14 = vcmp.gt.f32.partialorder %v4107_v51, 0.0  ;;  %vm1674_vm9 = vcmp.gt.f32.partialorder %v4119_v1, 0.0 }
 0x365   :  { %v3226_v6 = vpop.eup %3225  ;;  %v1718_v39 = vsel %vm4168_vm11, %v1705_v24, %v4075_v62  ;;  %v1704_v13 = vsel %vm1672_vm3, %v4039_v42, %v2483_v50  ;;  %3241 = vpow2.f32 %v1358_v48  ;;  %vm1347_vm15 = vcmp.gt.f32.partialorder %v4153_v7, 0.0 }
 0x366   :  { %v3228_v36 = vpop.eup %3227  ;;  %v2470_v17 = vadd.f32 -1.0, %v3226_v6  ;;  %v1717_v30 = vsel %vm4168_vm11, %v1704_v13, %v1387_v60  ;;  %3243 = vrcp.f32 %v1526_v49  ;;  %vm1346_vm5 = vcmp.gt.f32.partialorder %v4162_v8, 0.0 }
 0x367   :  { %v3230_v58 = vpop.eup %3229  ;;  %v2469_v2 = vadd.f32 -1.0, %v3228_v36  ;;  %2841 = vmatprep.mubr.msk.f32.mxu1 %vm188_vm1, %v1717_v30  ;;  %v2821_v10 = vpop.f32.mrb[28].mxu0  ;;  %3245 = vrcp.f32 %v1525_v41  ;;  %vm1877_vm6 = vcmask 64512  }
 0x368   :  { %v1377_v28 = vsel %vm1345_vm8, %v4084_v40, %v2470_v17  ;;  %v3232_v62 = vpop.eup %3231  ;;  %2842 = vmatmul.mubr.msk.f32.vlgmr.msra.gmra.mrb[18].mxu1 %vm188_vm1, %v1718_v39  ;;  %v1669_v56 = vmul.f32 %v3230_v58, %v2821_v10  ;;  %v1645_v14 = vpop.f32.mrb[29].mxu0 }
 0x369   :  { %v1376_v42 = vsel %vm1344_vm12, %v4092_v11, %v2469_v2  ;;  %v1390_v40 = vsel %vm4052_vm7, %v1377_v28, %v1060_v23  ;;  %v2486_v12 = vadd.f32 -1.0, %v3232_v62  ;;  %v1668_v22 = vmul.f32 %v4056_v3, %v1645_v14 }
 0x36a   :  { %v3234_v60 = vpop.eup %3233  ;;  %v1389_v11 = vsel %vm4052_vm7, %v1376_v42, %v1059_v25  ;;  %v1690_v59 = vmul.f32 1.442695, %v1669_v56  ;;  %vm1677_vm4 = vcmp.gt.f32.partialorder %v1669_v56, 0.0 }
 0x36b   :  { %v2485_v44 = vadd.f32 -1.0, %v3234_v60  ;;  %v3236_v35 = vpop.eup %3235  ;;  %v1707_v31 = vsel %vm1675_vm14, %v4107_v51, %v2486_v12  ;;  %v1688_v23 = vmul.f32 1.442695, %v1668_v22  ;;  %vm1676_vm3 = vcmp.gt.f32.partialorder %v1668_v22, 0.0 }
 0x36c   :  { %v3238_v33 = vpop.eup %3237  ;;  %3247 = vpow2.f32 %v1690_v59  ;;  %v2796_v49 = vpop.f32.mrb[16].mxu1  ;;  %v1720_v19 = vsel %vm4168_vm11, %v1707_v31, %v1390_v40 }
 0x36d   :  { %v1706_v3 = vsel %vm1674_vm9, %v4119_v1, %v2485_v44  ;;  %3249 = vpow2.f32 %v1688_v23  ;;  %v1341_v5 = vmul.f32 %v3238_v33, %v2796_v49  ;;  %v1325_v25 = vpop.f32.mrb[17].mxu1 }
 0x36e   :  { %v1719_v50 = vsel %vm4168_vm11, %v1706_v3, %v1389_v11  ;;  %v3240_v48 = vpop.eup %3239  ;;  %v1340_v6 = vmul.f32 %v3236_v35, %v1325_v25 }
 0x36f   :  { %2844 = vmatprep.mubr.msk.f32.mxu1 %vm188_vm1, %v1719_v50  ;;  %v3242_v51 = vpop.eup %3241  ;;  %v2472_v41 = vadd.f32 -1.0, %v3240_v48  ;;  %v1364_v24 = vmul.f32 1.442695, %v1341_v5  ;;  %vm1349_vm8 = vcmp.gt.f32.partialorder %v1341_v5, 0.0 }
 0x370   :  { %2845 = vmatmul.mubr.msk.f32.gmra.mrb[20].mxu1 %vm188_vm1, %v1720_v19  ;;  %v2471_v1 = vadd.f32 -1.0, %v3242_v51  ;;  %v1362_v36 = vmul.f32 1.442695, %v1340_v6  ;;  %v3244_v39 = vpop.eup %3243  ;;  %vm1348_vm12 = vcmp.gt.f32.partialorder %v1340_v6, 0.0 }
 0x371   :  { %v1379_v13 = vsel %vm1347_vm15, %v4153_v7, %v2472_v41  ;;  %3251 = vpow2.f32 %v1364_v24  ;;  %v2824_v17 = vpop.f32.mrb[30].mxu0  ;;  %v3246_v58 = vpop.eup %3245 }
 0x372   :  { %v1378_v2 = vsel %vm1346_vm5, %v4162_v8, %v2471_v1  ;;  %3253 = vpow2.f32 %v1362_v36  ;;  %v1671_v30 = vmul.f32 %v3244_v39, %v2824_v17  ;;  %v1655_v28 = vpop.f32.mrb[31].mxu0  ;;  %v1392_v10 = vsel %vm4052_vm7, %v1379_v13, %v1062_v9 }
 0x373   :  { %v1670_v62 = vmul.f32 %v3246_v58, %v1655_v28  ;;  %v1391_v7 = vsel %vm4052_vm7, %v1378_v2, %v1061_v29 }
 0x374   :  { %v1694_v8 = vmul.f32 1.442695, %v1671_v30  ;;  %vm1679_vm14 = vcmp.gt.f32.partialorder %v1671_v30, 0.0 }
 0x375   :  { %v1692_v42 = vmul.f32 1.442695, %v1670_v62  ;;  %vm1678_vm9 = vcmp.gt.f32.partialorder %v1670_v62, 0.0 }
 0x376   :  { %v3248_v14 = vpop.eup %3247  ;;  %3255 = vpow2.f32 %v1694_v8 }
 0x377   :  { %v3250_v40 = vpop.eup %3249  ;;  %v2488_v60 = vadd.f32 -1.0, %v3248_v14  ;;  %3257 = vpow2.f32 %v1692_v42 }
 0x378   :  { %v2487_v34 = vadd.f32 -1.0, %v3250_v40 }
 0x379   :  { %v1709_v57 = vsel %vm1677_vm4, %v1669_v56, %v2488_v60 }
 0x37a   :  { %v1708_v9 = vsel %vm1676_vm3, %v1668_v22, %v2487_v34  ;;  %v1722_v12 = vsel %vm4168_vm11, %v1709_v57, %v1392_v10 }
 0x37b   :  { %v3252_v11 = vpop.eup %3251  ;;  %v1721_v16 = vsel %vm4168_vm11, %v1708_v9, %v1391_v7 }
 0x37c   :  { %v3254_v52 = vpop.eup %3253  ;;  %v2474_v29 = vadd.f32 -1.0, %v3252_v11  ;;  %2847 = vmatprep.mubr.msk.f32.mxu1 %vm188_vm1, %v1721_v16 }
 0x37d   :  { %v2473_v44 = vadd.f32 -1.0, %v3254_v52  ;;  %2848 = vmatmul.mubr.msk.f32.gmra.mrb[22].mxu1 %vm188_vm1, %v1722_v12 }
 0x37e   :  { %v1381_v59 = vsel %vm1349_vm8, %v1341_v5, %v2474_v29 }
 0x37f   :  { %v1380_v56 = vsel %vm1348_vm12, %v1340_v6, %v2473_v44  ;;  %v1394_v22 = vsel %vm4052_vm7, %v1381_v59, %v1064_v63 }
 0x380   :  { %v3256_v35 = vpop.eup %3255  ;;  %v1393_v31 = vsel %vm4052_vm7, %v1380_v56, %v1063_v27  ;;  %vm4263_vm7 = vmpackc.low %vm1877_vm6, %vm1877_vm6 }
 0x381   :  { %v3258_v23 = vpop.eup %3257  ;;  %v2490_v33 = vadd.f32 -1.0, %v3256_v35 }
 0x382   :  { %v2489_v3 = vadd.f32 -1.0, %v3258_v23 }
 0x383   :  { %v1711_v49 = vsel %vm1679_vm14, %v1671_v30, %v2490_v33 }
 0x384   :  { %v1710_v19 = vsel %vm1678_vm9, %v1670_v62, %v2489_v3  ;;  %v1724_v45 = vsel %vm4168_vm11, %v1711_v49, %v1394_v22 }
 0x385   :  { %v1723_v4 = vsel %vm4168_vm11, %v1710_v19, %v1393_v31 }
 0x386   :  { %2850 = vmatprep.mubr.msk.f32.mxu1 %vm188_vm1, %v1723_v4 }
 0x387   :  { %2851 = vmatmul.mubr.msk.f32.gmra.mrb[24].mxu1 %vm188_vm1, %v1724_v45 }
 0x43b   :  { %v2843_v20 = vpop.f32.mrb[18].mxu1 }
 0x43c   :  { %v1870_v21 = vmul.f32 %v2843_v20, %v2499_v18  ;;  %v1823_v63 = vpop.f32.mrb[19].mxu1 }
 0x43d   :  { %v1869_v27 = vmul.f32 %v2499_v18, %v1823_v63  ;;  %v3005_v43 = vpack.c.bf16 %v2843_v20, %v1823_v63 }
 0x43e   :  { %v1881_v5 = vsel %vm1877_vm6, %v1870_v21, 0.0 }
 0x43f   :  { %1882 = vadd.xlane.f32.xlu1 %v1881_v5  ;;  %3007 = vmatpush3.bf16.xpose.msk.msra.mxu0 %vm4263_vm7, %v3005_v43  ;;  %v1878_v25 = vsel %vm1877_vm6, %v1869_v27, 0.0 }
 0x440   :  { %3021 = vmatprep.subr.bf16.mxu1 %v3005_v43  ;;  %1879 = vadd.xlane.f32.xlu0 %v1878_v25 }
 0x441   :  { %3023 = vmatpush3.bf16.msra.mxu1 %v3005_v43  ;;  %3008 = vmatprep.subr.bf16.mxu0 %v3339_v15 }
 0x443   :  { %v2846_v50 = vpop.f32.mrb[20].mxu1 }
 0x444   :  { %v1872_v48 = vmul.f32 %v2846_v50, %v2499_v18  ;;  %v1833_v6 = vpop.f32.mrb[21].mxu1 }
 0x445   :  { %v1871_v51 = vmul.f32 %v2499_v18, %v1833_v6  ;;  %v3009_v41 = vpack.c.bf16 %v2846_v50, %v1833_v6 }
 0x446   :  { %v1887_v24 = vsel %vm1877_vm6, %v1872_v48, 0.0 }
 0x447   :  { %1888 = vadd.xlane.f32.xlu1 %v1887_v24  ;;  %3025 = vmatprep.subr.bf16.mxu1 %v3009_v41  ;;  %v1884_v1 = vsel %vm1877_vm6, %v1871_v51, 0.0 }
 0x448   :  { %3011 = vmatpush3.bf16.xpose.msk.msra.mxu0 %vm4263_vm7, %v3009_v41  ;;  %3027 = vmatpush3.bf16.msra.mxu1 %v3009_v41 }
 0x449   :  { %1885 = vadd.xlane.f32.xlu0 %v1884_v1  ;;  %3012 = vmatprep.subr.bf16.mxu0 %v3339_v15 }
 0x450   :  { %v2849_v36 = vpop.f32.mrb[22].mxu1 }
 0x451   :  { %v1874_v39 = vmul.f32 %v2849_v36, %v2499_v18  ;;  %v1843_v13 = vpop.f32.mrb[23].mxu1 }
 0x452   :  { %v1873_v17 = vmul.f32 %v2499_v18, %v1843_v13  ;;  %v3013_v58 = vpack.c.bf16 %v2849_v36, %v1843_v13 }
 0x453   :  { %v1893_v2 = vsel %vm1877_vm6, %v1874_v39, 0.0 }
 0x454   :  { %1894 = vadd.xlane.f32.xlu1 %v1893_v2  ;;  %3015 = vmatpush3.bf16.xpose.msk.msra.mxu0 %vm4263_vm7, %v3013_v58  ;;  %v1890_v30 = vsel %vm1877_vm6, %v1873_v17, 0.0 }
 0x455   :  { %3029 = vmatprep.subr.bf16.mxu1 %v3013_v58  ;;  %1891 = vadd.xlane.f32.xlu0 %v1890_v30 }
 0x456   :  { %3031 = vmatpush3.bf16.msra.mxu1 %v3013_v58  ;;  %3016 = vmatprep.subr.bf16.mxu0 %v3339_v15  ;;  %v1902_v15 = vld [vmem:[%s4451_s7] sm:$0x1] }
 0x45a   :  { %v2852_v28 = vpop.f32.mrb[24].mxu1 }
 0x45b   :  { %v1876_v10 = vmul.f32 %v2852_v28, %v2499_v18  ;;  %v1853_v62 = vpop.f32.mrb[25].mxu1 }
 0x45c   :  { %v1875_v7 = vmul.f32 %v2499_v18, %v1853_v62  ;;  %v3017_v8 = vpack.c.bf16 %v2852_v28, %v1853_v62 }
 0x45d   :  { %v1899_v42 = vsel %vm1877_vm6, %v1876_v10, 0.0 }
 0x45e   :  { %1900 = vadd.xlane.f32.xlu1 %v1899_v42  ;;  %3019 = vmatpush3.bf16.xpose.msk.msra.mxu0 %vm4263_vm7, %v3017_v8  ;;  %v1896_v14 = vsel %vm1877_vm6, %v1875_v7, 0.0 }
 0x45f   :  { %3033 = vmatprep.subr.bf16.mxu1 %v3017_v8  ;;  %1897 = vadd.xlane.f32.xlu0 %v1896_v14 }
 0x460   :  { %3035 = vmatpush3.bf16.msra.mxu1 %v3017_v8 }
 0x465   :  { %2870 = vmatmul.mubr.msk.f32.vlgmr.msra.gmra.mrb[32].mxu0 %vm1877_vm6, %v1902_v15 }
 0x4cc   :  { %v1883_v40 = vpop.xlane.xlu1 %1882 }
 0x4cd   :  { %v1880_v60 = vpop.xlane.xlu0 %1879 }
 0x4d4   :  { %v1889_v34 = vpop.xlane.xlu1 %1888 }
 0x4d6   :  { %v1886_v57 = vpop.xlane.xlu0 %1885 }
 0x4e1   :  { %v1895_v9 = vpop.xlane.xlu1 %1894 }
 0x4e2   :  { %v1892_v12 = vpop.xlane.xlu0 %1891 }
 0x4eb   :  { %v1901_v29 = vpop.xlane.xlu1 %1900 }
 0x4ec   :  { %v1898_v44 = vpop.xlane.xlu0 %1897 }
 0x538   :  { %v1996_v11 = vpop.f32.mrb[32].mxu0 }
 0x539   :  { %v2003_v16 = vrot.slane %v1996_v11, %v439_v47  ;;  %v2871_v52 = vpop.f32.mrb[33].mxu0 }
 0x53b   :  { %v2004_v59 = vadd.f32 %v2003_v16, %v1880_v60  ;;  %v2005_v56 = vadd.f32 %v2003_v16, %v1883_v40  ;;  %v2006_v22 = vadd.f32 %v2003_v16, %v1886_v57  ;;  %v2007_v35 = vadd.f32 %v2003_v16, %v1889_v34 }
 0x53c   :  { %v2008_v31 = vadd.f32 %v2003_v16, %v1892_v12  ;;  %v2009_v23 = vadd.f32 %v2003_v16, %v1895_v9  ;;  %v2010_v33 = vadd.f32 %v2003_v16, %v1898_v44  ;;  %v2011_v3 = vadd.f32 %v2003_v16, %v1901_v29 }
 0x53d   :  { %vm2012_vm11 = vcmp.gt.f32.partialorder %v2004_v59, 0.0  ;;  %v2020_v49 = vmul.f32 0.2, %v2004_v59  ;;  %vm2013_vm15 = vcmp.gt.f32.partialorder %v2005_v56, 0.0  ;;  %v2021_v19 = vmul.f32 0.2, %v2005_v56 }
 0x53e   :  { %vm2014_vm5 = vcmp.gt.f32.partialorder %v2006_v22, 0.0  ;;  %v2022_v45 = vmul.f32 0.2, %v2006_v22  ;;  %vm2015_vm4 = vcmp.gt.f32.partialorder %v2007_v35, 0.0  ;;  %v2023_v46 = vmul.f32 0.2, %v2007_v35 }
 0x53f   :  { %v2028_v47 = vsel %vm2012_vm11, %v2004_v59, %v2020_v49  ;;  %v2029_v4 = vsel %vm2013_vm15, %v2005_v56, %v2021_v19  ;;  %vm2016_vm3 = vcmp.gt.f32.partialorder %v2008_v31, 0.0  ;;  %v2024_v18 = vmul.f32 0.2, %v2008_v31 }
 0x540   :  { %v2036_v20 = vsub.f32 0.0, %v2028_v47  ;;  %v2037_v21 = vsub.f32 0.0, %v2029_v4  ;;  %v2030_v63 = vsel %vm2014_vm5, %v2006_v22, %v2022_v45  ;;  %v2031_v32 = vsel %vm2015_vm4, %v2007_v35, %v2023_v46 }
 0x541   :  { %v2038_v27 = vsub.f32 0.0, %v2030_v63  ;;  %v2039_v43 = vsub.f32 0.0, %v2031_v32  ;;  %v2032_v5 = vsel %vm2016_vm3, %v2008_v31, %v2024_v18  ;;  %vm2017_vm8 = vcmp.gt.f32.partialorder %v2009_v23, 0.0 }
 0x542   :  { %v2044_v25 = vmul.f32 1.442695, %v2036_v20  ;;  %v2046_v50 = vmul.f32 1.442695, %v2037_v21  ;;  %v2040_v48 = vsub.f32 0.0, %v2032_v5  ;;  %vm2018_vm12 = vcmp.gt.f32.partialorder %v2010_v33, 0.0 }
 0x543   :  { %v2048_v6 = vmul.f32 1.442695, %v2038_v27  ;;  %v2050_v51 = vmul.f32 1.442695, %v2039_v43  ;;  %v2025_v41 = vmul.f32 0.2, %v2009_v23 }
 0x544   :  { %3259 = vpow2.f32 %v2044_v25  ;;  %v2052_v24 = vmul.f32 1.442695, %v2040_v48  ;;  %v2026_v1 = vmul.f32 0.2, %v2010_v33  ;;  %vm2019_vm14 = vcmp.gt.f32.partialorder %v2011_v3, 0.0 }
 0x545   :  { %3261 = vpow2.f32 %v2046_v50  ;;  %v2033_v36 = vsel %vm2017_vm8, %v2009_v23, %v2025_v41  ;;  %v2027_v39 = vmul.f32 0.2, %v2011_v3 }
 0x546   :  { %3263 = vpow2.f32 %v2048_v6  ;;  %v2041_v13 = vsub.f32 0.0, %v2033_v36  ;;  %v2034_v17 = vsel %vm2018_vm12, %v2010_v33, %v2026_v1 }
 0x547   :  { %3265 = vpow2.f32 %v2050_v51  ;;  %v2042_v58 = vsub.f32 0.0, %v2034_v17  ;;  %v2035_v2 = vsel %vm2019_vm14, %v2011_v3, %v2027_v39 }
 0x548   :  { %3267 = vpow2.f32 %v2052_v24  ;;  %v2054_v30 = vmul.f32 1.442695, %v2041_v13  ;;  %v2043_v28 = vsub.f32 0.0, %v2035_v2 }
 0x549   :  { %v2056_v10 = vmul.f32 1.442695, %v2042_v58 }
 0x54a   :  { %3269 = vpow2.f32 %v2054_v30  ;;  %v2058_v62 = vmul.f32 1.442695, %v2043_v28 }
 0x54b   :  { %3271 = vpow2.f32 %v2056_v10 }
 0x54c   :  { %3273 = vpow2.f32 %v2058_v62 }
 0x54e   :  { %v3260_v7 = vpop.eup %3259 }
 0x54f   :  { %v3262_v8 = vpop.eup %3261  ;;  %v2060_v42 = vsel %vm45_vm13, %v3260_v7, 0.0  ;;  %vm4468_vm13 = vcmp.gt.f32.partialorder %v3617_v38, 0.0 }
 0x550   :  { %v3264_v14 = vpop.eup %3263  ;;  %2888 = vmatprep.mubr.msk.f32.mxu1 %vm188_vm1, %v2060_v42  ;;  %v2061_v15 = vsel %vm46_vm10, %v3262_v8, 0.0  ;;  %v2068_v40 = vsel %vm188_vm1, %v2060_v42, 0.0  ;;  %vm4467_vm10 = vcmp.gt.f32.partialorder %v3626_v53, 0.0 }
 0x551   :  { %v3266_v60 = vpop.eup %3265  ;;  %v2071_v34 = vsel %vm188_vm1, %v2061_v15, 0.0  ;;  %2889 = vmatmul.mubr.msk.f32.vlgmr.msra.gmra.mrb[26].mxu1 %vm188_vm1, %v2061_v15  ;;  %2069 = vadd.xlane.f32.xlu0 %v2068_v40  ;;  %v2062_v57 = vsel %vm47_vm2, %v3264_v14, 0.0  ;;  %vm4470_vm2 = vcmp.gt.f32.partialorder %v3642_v0, 0.0 }
 0x552   :  { %v3268_v9 = vpop.eup %3267  ;;  %2072 = vadd.xlane.f32.xlu1 %v2071_v34  ;;  %2891 = vmatprep.mubr.msk.f32.mxu1 %vm188_vm1, %v2062_v57  ;;  %v2063_v37 = vsel %vm48_vm0, %v3266_v60, 0.0  ;;  %v2074_v12 = vsel %vm188_vm1, %v2062_v57, 0.0  ;;  %vm4469_vm0 = vcmp.gt.f32.partialorder %v3631_v55, 0.0 }
 0x553   :  { %v2077_v11 = vsel %vm188_vm1, %v2063_v37, 0.0  ;;  %v2064_v16 = vsel %vm4467_vm10, %v3268_v9, 0.0 }
 0x554   :  { %v3270_v26 = vpop.eup %3269  ;;  %v2080_v29 = vsel %vm188_vm1, %v2064_v16, 0.0 }
 0x555   :  { %2892 = vmatmul.mubr.msk.f32.gmra.mrb[28].mxu1 %vm188_vm1, %v2063_v37  ;;  %2075 = vadd.xlane.f32.xlu0 %v2074_v12  ;;  %v3272_v61 = vpop.eup %3271  ;;  %v2065_v52 = vsel %vm4468_vm13, %v3270_v26, 0.0 }
 0x556   :  { %2078 = vadd.xlane.f32.xlu1 %v2077_v11  ;;  %2894 = vmatprep.mubr.msk.f32.mxu1 %vm188_vm1, %v2064_v16  ;;  %v3274_v54 = vpop.eup %3273  ;;  %v2083_v44 = vsel %vm188_vm1, %v2065_v52, 0.0  ;;  %v2066_v59 = vsel %vm4469_vm0, %v3272_v61, 0.0 }
 0x557   :  { %v2067_v53 = vsel %vm4470_vm2, %v3274_v54, 0.0  ;;  %v2086_v38 = vsel %vm188_vm1, %v2066_v59, 0.0 }
 0x558   :  { %v2089_v56 = vsel %vm188_vm1, %v2067_v53, 0.0 }
 0x559   :  { %2895 = vmatmul.mubr.msk.f32.gmra.mrb[30].mxu1 %vm188_vm1, %v2065_v52  ;;  %2081 = vadd.xlane.f32.xlu0 %v2080_v29 }
 0x55a   :  { %2084 = vadd.xlane.f32.xlu1 %v2083_v44  ;;  %2897 = vmatprep.mubr.msk.f32.mxu1 %vm188_vm1, %v2066_v59 }
 0x55d   :  { %2898 = vmatmul.mubr.msk.f32.gmra.mrb[32].mxu1 %vm188_vm1, %v2067_v53  ;;  %2087 = vadd.xlane.f32.xlu0 %v2086_v38 }
 0x55e   :  { %2090 = vadd.xlane.f32.xlu1 %v2089_v56 }
 0x5de   :  { %v2070_v35 = vpop.xlane.xlu0 %2069 }
 0x5df   :  { %v2073_v22 = vpop.xlane.xlu1 %2072  ;;  %v2092_v33 = vmax.f32 %v2070_v35, 1e-30 }
 0x5e0   :  { %v2093_v55 = vmax.f32 %v2073_v22, 1e-30 }
 0x5e2   :  { %v2076_v23 = vpop.xlane.xlu0 %2075  ;;  %3275 = vrcp.f32 %v2093_v55 }
 0x5e3   :  { %v2079_v31 = vpop.xlane.xlu1 %2078  ;;  %3277 = vrcp.f32 %v2092_v33  ;;  %v2094_v0 = vmax.f32 %v2076_v23, 1e-30 }
 0x5e4   :  { %v2095_v49 = vmax.f32 %v2079_v31, 1e-30 }
 0x5e6   :  { %v2082_v19 = vpop.xlane.xlu0 %2081  ;;  %3279 = vrcp.f32 %v2095_v49 }
 0x5e7   :  { %v2085_v3 = vpop.xlane.xlu1 %2084  ;;  %3281 = vrcp.f32 %v2094_v0  ;;  %v2096_v46 = vmax.f32 %v2082_v19, 1e-30 }
 0x5e8   :  { %v2097_v45 = vmax.f32 %v2085_v3, 1e-30 }
 0x5ea   :  { %v2088_v4 = vpop.xlane.xlu0 %2087  ;;  %3283 = vrcp.f32 %v2097_v45 }
 0x5eb   :  { %v2091_v47 = vpop.xlane.xlu1 %2090  ;;  %3285 = vrcp.f32 %v2096_v46  ;;  %v2098_v20 = vmax.f32 %v2088_v4, 1e-30 }
 0x5ec   :  { %v2099_v18 = vmax.f32 %v2091_v47, 1e-30  ;;  %v3276_v21 = vpop.eup %3275 }
 0x5ed   :  { %v3278_v32 = vpop.eup %3277 }
 0x5ee   :  { %3287 = vrcp.f32 %v2099_v18 }
 0x5ef   :  { %3289 = vrcp.f32 %v2098_v20 }
 0x5f0   :  { %v3280_v50 = vpop.eup %3279 }
 0x5f1   :  { %v3282_v51 = vpop.eup %3281 }
 0x5f4   :  { %v3284_v39 = vpop.eup %3283 }
 0x5f5   :  { %v3286_v58 = vpop.eup %3285 }
 0x5f8   :  { %v3288_v62 = vpop.eup %3287 }
 0x5f9   :  { %v3290_v42 = vpop.eup %3289 }
 0x624   :  { %v2890_v63 = vpop.f32.mrb[26].mxu1 }
 0x625   :  { %v2238_v27 = vmul.f32 %v3276_v21, %v2890_v63  ;;  %v2198_v43 = vpop.f32.mrb[27].mxu1 }
 0x626   :  { %v2237_v5 = vmul.f32 %v3278_v32, %v2198_v43 }
 0x627   :  { %v2255_v25 = vmul.f32 1.442695, %v2238_v27  ;;  %vm2246_vm1 = vcmp.gt.f32.partialorder %v2238_v27, 0.0 }
 0x628   :  { %v2253_v48 = vmul.f32 1.442695, %v2237_v5  ;;  %v2893_v6 = vpop.f32.mrb[28].mxu1  ;;  %vm2245_vm9 = vcmp.gt.f32.partialorder %v2237_v5, 0.0 }
 0x629   :  { %3291 = vpow2.f32 %v2255_v25  ;;  %v2240_v41 = vmul.f32 %v3280_v50, %v2893_v6  ;;  %v2208_v24 = vpop.f32.mrb[29].mxu1 }
 0x62a   :  { %3293 = vpow2.f32 %v2253_v48  ;;  %v2239_v1 = vmul.f32 %v3282_v51, %v2208_v24 }
 0x62b   :  { %v2259_v36 = vmul.f32 1.442695, %v2240_v41  ;;  %vm2248_vm7 = vcmp.gt.f32.partialorder %v2240_v41, 0.0 }
 0x62c   :  { %v2257_v13 = vmul.f32 1.442695, %v2239_v1  ;;  %v2896_v17 = vpop.f32.mrb[30].mxu1  ;;  %vm2247_vm11 = vcmp.gt.f32.partialorder %v2239_v1, 0.0 }
 0x62d   :  { %3295 = vpow2.f32 %v2259_v36  ;;  %v2242_v2 = vmul.f32 %v3284_v39, %v2896_v17  ;;  %v2218_v30 = vpop.f32.mrb[31].mxu1 }
 0x62e   :  { %3297 = vpow2.f32 %v2257_v13  ;;  %v2241_v28 = vmul.f32 %v3286_v58, %v2218_v30 }
 0x62f   :  { %v2263_v10 = vmul.f32 1.442695, %v2242_v2  ;;  %vm2250_vm15 = vcmp.gt.f32.partialorder %v2242_v2, 0.0 }
 0x630   :  { %v2261_v7 = vmul.f32 1.442695, %v2241_v28  ;;  %v2899_v8 = vpop.f32.mrb[32].mxu1  ;;  %vm2249_vm5 = vcmp.gt.f32.partialorder %v2241_v28, 0.0 }
 0x631   :  { %3299 = vpow2.f32 %v2263_v10  ;;  %v2244_v14 = vmul.f32 %v3288_v62, %v2899_v8  ;;  %v2228_v15 = vpop.f32.mrb[33].mxu1 }
 0x632   :  { %3301 = vpow2.f32 %v2261_v7  ;;  %v2243_v40 = vmul.f32 %v3290_v42, %v2228_v15 }
 0x633   :  { %v3292_v60 = vpop.eup %3291  ;;  %v2267_v34 = vmul.f32 1.442695, %v2244_v14  ;;  %vm2252_vm4 = vcmp.gt.f32.partialorder %v2244_v14, 0.0 }
 0x634   :  { %v3294_v57 = vpop.eup %3293  ;;  %v2265_v9 = vmul.f32 1.442695, %v2243_v40  ;;  %v2518_v37 = vadd.f32 -1.0, %v3292_v60  ;;  %vm2251_vm3 = vcmp.gt.f32.partialorder %v2243_v40, 0.0 }
 0x635   :  { %3303 = vpow2.f32 %v2267_v34  ;;  %v2517_v26 = vadd.f32 -1.0, %v3294_v57 }
 0x636   :  { %3305 = vpow2.f32 %v2265_v9  ;;  %v4324_v12 = vsel %vm2246_vm1, %v2238_v27, %v2518_v37 }
 0x637   :  { %v3296_v11 = vpop.eup %3295  ;;  %v2288_v16 = vsel %vm1877_vm6, %v4324_v12, -inf  ;;  %v4328_v61 = vsel %vm2245_vm9, %v2237_v5, %v2517_v26 }
 0x638   :  { %v3298_v52 = vpop.eup %3297  ;;  %2289 = vmax.xlane.f32.xlu1 %v2288_v16  ;;  %v2285_v54 = vsel %vm1877_vm6, %v4328_v61, -inf  ;;  %v2520_v29 = vadd.f32 -1.0, %v3296_v11 }
 0x639   :  { %2286 = vmax.xlane.f32.xlu0 %v2285_v54  ;;  %v2519_v44 = vadd.f32 -1.0, %v3298_v52 }
 0x63a   :  { %v4332_v59 = vsel %vm2248_vm7, %v2240_v41, %v2520_v29 }
 0x63b   :  { %v3300_v53 = vpop.eup %3299  ;;  %v2294_v38 = vsel %vm1877_vm6, %v4332_v59, -inf  ;;  %v4336_v56 = vsel %vm2247_vm11, %v2239_v1, %v2519_v44 }
 0x63c   :  { %v3302_v22 = vpop.eup %3301  ;;  %2295 = vmax.xlane.f32.xlu1 %v2294_v38  ;;  %v2291_v35 = vsel %vm1877_vm6, %v4336_v56, -inf  ;;  %v2522_v31 = vadd.f32 -1.0, %v3300_v53 }
 0x63d   :  { %2292 = vmax.xlane.f32.xlu0 %v2291_v35  ;;  %v2521_v23 = vadd.f32 -1.0, %v3302_v22 }
 0x63e   :  { %v4340_v55 = vsel %vm2250_vm15, %v2242_v2, %v2522_v31 }
 0x63f   :  { %v3304_v33 = vpop.eup %3303  ;;  %v2300_v3 = vsel %vm1877_vm6, %v4340_v55, -inf  ;;  %v4344_v49 = vsel %vm2249_vm5, %v2241_v28, %v2521_v23 }
 0x640   :  { %v3306_v19 = vpop.eup %3305  ;;  %2301 = vmax.xlane.f32.xlu1 %v2300_v3  ;;  %v2297_v0 = vsel %vm1877_vm6, %v4344_v49, -inf  ;;  %v2524_v45 = vadd.f32 -1.0, %v3304_v33 }
 0x641   :  { %2298 = vmax.xlane.f32.xlu0 %v2297_v0  ;;  %v2523_v46 = vadd.f32 -1.0, %v3306_v19 }
 0x642   :  { %v4348_v47 = vsel %vm2252_vm4, %v2244_v14, %v2524_v45 }
 0x643   :  { %v2306_v4 = vsel %vm1877_vm6, %v4348_v47, -inf  ;;  %v4352_v18 = vsel %vm2251_vm3, %v2243_v40, %v2523_v46 }
 0x644   :  { %2307 = vmax.xlane.f32.xlu1 %v2306_v4  ;;  %v2303_v20 = vsel %vm1877_vm6, %v4352_v18, -inf }
 0x645   :  { %2304 = vmax.xlane.f32.xlu0 %v2303_v20 }
 0x6c5   :  { %v4356_v21 = vpop.xlane.xlu1 %2289 }
 0x6c6   :  { %v2310_v63 = vsub.f32 %v4324_v12, %v4356_v21  ;;  %v4360_v32 = vpop.xlane.xlu0 %2286 }
 0x6c7   :  { %v2309_v27 = vsub.f32 %v4328_v61, %v4360_v32 }
 0x6c8   :  { %v2319_v43 = vmul.f32 1.442695, %v2310_v63 }
 0x6c9   :  { %v2317_v5 = vmul.f32 1.442695, %v2309_v27  ;;  %v4364_v25 = vpop.xlane.xlu1 %2295 }
 0x6ca   :  { %3307 = vpow2.f32 %v2319_v43  ;;  %v2312_v50 = vsub.f32 %v4332_v59, %v4364_v25  ;;  %v4368_v48 = vpop.xlane.xlu0 %2292 }
 0x6cb   :  { %3309 = vpow2.f32 %v2317_v5  ;;  %v2311_v6 = vsub.f32 %v4336_v56, %v4368_v48 }
 0x6cc   :  { %v2323_v51 = vmul.f32 1.442695, %v2312_v50 }
 0x6cd   :  { %v2321_v41 = vmul.f32 1.442695, %v2311_v6  ;;  %v4372_v24 = vpop.xlane.xlu1 %2301 }
 0x6ce   :  { %3311 = vpow2.f32 %v2323_v51  ;;  %v2314_v1 = vsub.f32 %v4340_v55, %v4372_v24  ;;  %v4376_v36 = vpop.xlane.xlu0 %2298 }
 0x6cf   :  { %3313 = vpow2.f32 %v2321_v41  ;;  %v2313_v39 = vsub.f32 %v4344_v49, %v4376_v36 }
 0x6d0   :  { %v2327_v13 = vmul.f32 1.442695, %v2314_v1 }
 0x6d1   :  { %v2325_v17 = vmul.f32 1.442695, %v2313_v39  ;;  %v4380_v58 = vpop.xlane.xlu1 %2307 }
 0x6d2   :  { %3315 = vpow2.f32 %v2327_v13  ;;  %v2316_v2 = vsub.f32 %v4348_v47, %v4380_v58  ;;  %v4384_v30 = vpop.xlane.xlu0 %2304 }
 0x6d3   :  { %3317 = vpow2.f32 %v2325_v17  ;;  %v2315_v28 = vsub.f32 %v4352_v18, %v4384_v30 }
 0x6d4   :  { %v3308_v10 = vpop.eup %3307  ;;  %v2331_v62 = vmul.f32 1.442695, %v2316_v2 }
 0x6d5   :  { %v3310_v7 = vpop.eup %3309  ;;  %v2329_v8 = vmul.f32 1.442695, %v2315_v28  ;;  %v2336_v42 = vsel %vm1877_vm6, %v3308_v10, 0.0 }
 0x6d6   :  { %3319 = vpow2.f32 %v2331_v62  ;;  %2337 = vadd.xlane.f32.xlu1 %v2336_v42  ;;  %v2333_v14 = vsel %vm1877_vm6, %v3310_v7, 0.0 }
 0x6d7   :  { %3321 = vpow2.f32 %v2329_v8  ;;  %2334 = vadd.xlane.f32.xlu0 %v2333_v14 }
 0x6d8   :  { %v3312_v15 = vpop.eup %3311 }
 0x6d9   :  { %v3314_v40 = vpop.eup %3313  ;;  %v2342_v60 = vsel %vm1877_vm6, %v3312_v15, 0.0 }
 0x6da   :  { %2343 = vadd.xlane.f32.xlu1 %v2342_v60  ;;  %v2339_v34 = vsel %vm1877_vm6, %v3314_v40, 0.0 }
 0x6db   :  { %2340 = vadd.xlane.f32.xlu0 %v2339_v34 }
 0x6dc   :  { %v3316_v57 = vpop.eup %3315 }
 0x6dd   :  { %v3318_v9 = vpop.eup %3317  ;;  %v2348_v37 = vsel %vm1877_vm6, %v3316_v57, 0.0 }
 0x6de   :  { %2349 = vadd.xlane.f32.xlu1 %v2348_v37  ;;  %v2345_v26 = vsel %vm1877_vm6, %v3318_v9, 0.0 }
 0x6df   :  { %2346 = vadd.xlane.f32.xlu0 %v2345_v26 }
 0x6e0   :  { %v3320_v11 = vpop.eup %3319 }
 0x6e1   :  { %v3322_v16 = vpop.eup %3321  ;;  %v2354_v52 = vsel %vm1877_vm6, %v3320_v11, 0.0 }
 0x6e2   :  { %2355 = vadd.xlane.f32.xlu1 %v2354_v52  ;;  %v2351_v54 = vsel %vm1877_vm6, %v3322_v16, 0.0 }
 0x6e3   :  { %2352 = vadd.xlane.f32.xlu0 %v2351_v54 }
 0x763   :  { %v2338_v29 = vpop.xlane.xlu1 %2337 }
 0x764   :  { %3323 = vlog2.f32 %v2338_v29  ;;  %v2335_v44 = vpop.xlane.xlu0 %2334 }
 0x765   :  { %3325 = vlog2.f32 %v2335_v44 }
 0x767   :  { %v2344_v53 = vpop.xlane.xlu1 %2343 }
 0x768   :  { %3327 = vlog2.f32 %v2344_v53  ;;  %v2341_v38 = vpop.xlane.xlu0 %2340 }
 0x769   :  { %3329 = vlog2.f32 %v2341_v38 }
 0x76b   :  { %v2350_v22 = vpop.xlane.xlu1 %2349 }
 0x76c   :  { %3331 = vlog2.f32 %v2350_v22  ;;  %v2347_v35 = vpop.xlane.xlu0 %2346 }
 0x76d   :  { %3333 = vlog2.f32 %v2347_v35 }
 0x76e   :  { %v3324_v31 = vpop.eup %3323 }
 0x76f   :  { %v3326_v23 = vpop.eup %3325  ;;  %v2360_v33 = vmul.f32 0.6931472, %v3324_v31  ;;  %v2356_v3 = vpop.xlane.xlu1 %2355 }
 0x770   :  { %v2358_v19 = vmul.f32 0.6931472, %v3326_v23  ;;  %3335 = vlog2.f32 %v2356_v3  ;;  %v2353_v0 = vpop.xlane.xlu0 %2352 }
 0x771   :  { %v2374_v45 = vadd.f32 %v2360_v33, %v4356_v21  ;;  %3337 = vlog2.f32 %v2353_v0 }
 0x772   :  { %v3328_v46 = vpop.eup %3327  ;;  %v2373_v4 = vadd.f32 %v2358_v19, %v4360_v32 }
 0x773   :  { %v3330_v20 = vpop.eup %3329  ;;  %v2382_v63 = vsub.f32 %v4324_v12, %v2374_v45  ;;  %v2364_v27 = vmul.f32 0.6931472, %v3328_v46 }
 0x774   :  { %v2381_v43 = vsub.f32 %v4328_v61, %v2373_v4  ;;  %v2362_v5 = vmul.f32 0.6931472, %v3330_v20 }
 0x775   :  { %2390 = vst.msk [vmem:[%s4452_s8 + $0x8] sm:$0xff] %vm1877_vm6, %v2382_v63  ;;  %v2376_v50 = vadd.f32 %v2364_v27, %v4364_v25 }
 0x776   :  { %v3332_v6 = vpop.eup %3331  ;;  %2389 = vst.msk [vmem:[%s4452_s8] sm:$0xff] %vm1877_vm6, %v2381_v43  ;;  %v2375_v21 = vadd.f32 %v2362_v5, %v4368_v48 }
 0x777   :  { %v3334_v12 = vpop.eup %3333  ;;  %v2384_v32 = vsub.f32 %v4332_v59, %v2376_v50  ;;  %v2368_v61 = vmul.f32 0.6931472, %v3332_v6 }
 0x778   :  { %v2383_v51 = vsub.f32 %v4336_v56, %v2375_v21  ;;  %v2366_v41 = vmul.f32 0.6931472, %v3334_v12 }
 0x779   :  { %2392 = vst.msk [vmem:[%s4452_s8 + $0x18] sm:$0xff] %vm1877_vm6, %v2384_v32  ;;  %v2378_v25 = vadd.f32 %v2368_v61, %v4372_v24 }
 0x77a   :  { %v3336_v1 = vpop.eup %3335  ;;  %2391 = vst.msk [vmem:[%s4452_s8 + $0x10] sm:$0xff] %vm1877_vm6, %v2383_v51  ;;  %v2377_v48 = vadd.f32 %v2366_v41, %v4376_v36 }
 0x77b   :  { %v3338_v59 = vpop.eup %3337  ;;  %v2386_v39 = vsub.f32 %v4340_v55, %v2378_v25  ;;  %v2372_v56 = vmul.f32 0.6931472, %v3336_v1 }
 0x77c   :  { %v2385_v13 = vsub.f32 %v4344_v49, %v2377_v48  ;;  %v2370_v17 = vmul.f32 0.6931472, %v3338_v59 }
 0x77d   :  { %2394 = vst.msk [vmem:[%s4452_s8 + $0x28] sm:$0xff] %vm1877_vm6, %v2386_v39  ;;  %v2380_v24 = vadd.f32 %v2372_v56, %v4380_v58 }
 0x77e   :  { %2393 = vst.msk [vmem:[%s4452_s8 + $0x20] sm:$0xff] %vm1877_vm6, %v2385_v13  ;;  %v2379_v36 = vadd.f32 %v2370_v17, %v4384_v30 }
 0x77f   :  { %v2388_v55 = vsub.f32 %v4348_v47, %v2380_v24 }
 0x780   :  { %v2387_v2 = vsub.f32 %v4352_v18, %v2379_v36 }
 0x781   :  { %2396 = vst.msk [vmem:[%s4452_s8 + $0x38] sm:$0xff] %vm1877_vm6, %v2388_v55 }
 0x782   :  { %2395 = vst.msk [vmem:[%s4452_s8 + $0x30] sm:$0xff] %vm1877_vm6, %v2387_v2 }

</bundles_post_ra>
